<compile_context>
chip_gen: v6e
topology: v6e:2x2x1
jax: 0.10.0
libtpu: 0.0.40
codegen_flags: <defaults>
</compile_context>

<pallas_src>
import functools
import jax
import jax.numpy as jnp
from jax.experimental import pallas as pl
from jax.experimental.pallas import tpu as pltpu

PAD = 0  # Constants.PAD


# ------------------------------------------------------------------ utilities
def _layer_norm(x, gamma, beta, eps=1e-5):
    mu = jnp.mean(x, axis=-1, keepdims=True)
    var = jnp.mean((x - mu) ** 2, axis=-1, keepdims=True)
    return (x - mu) * jax.lax.rsqrt(var + eps) * gamma + beta


def get_sinusoid_encoding_table(n_position, d_hid, padding_idx=PAD):
    pos = jnp.arange(n_position, dtype=jnp.float32)[:, None]
    i = jnp.arange(d_hid)[None, :]
    angle = pos / jnp.power(10000.0, (2 * (i // 2)).astype(jnp.float32) / d_hid)
    table = jnp.where(i % 2 == 0, jnp.sin(angle), jnp.cos(angle))
    table = table.at[padding_idx].set(0.0)
    return table.astype(jnp.float32)


def _round_up(x, m):
    return (x + m - 1) // m * m


def _vmem_limit_bytes(frac=0.6, fallback=40 * 1024 * 1024):
    """Generation-aware VMEM budget (leave headroom for double buffers/scratch)."""
    try:
        cap = pltpu.get_tpu_info().vmem_capacity_bytes
        return int(cap * frac)
    except Exception:
        return fallback  # conservative: fits v7x's 64 MiB physical VMEM


def _pick_batch_block(B, L, min_rows=256, max_steps=4):
    """Largest batch block that still gives >=2 grid steps (megacore + DMA overlap)
    while keeping the MXU M-dim (BB*L) reasonably full."""
    divisors = [d for d in range(1, B + 1) if B % d == 0]
    candidates = [d for d in divisors if d * L >= min_rows and B // d <= max_steps]
    bb = min(candidates) if candidates else B
    if bb == B and B > 1:          # make sure the second TensorCore has work
        bb = max(d for d in divisors if d < B)
    return bb


def _weight_spec(arr, single_buffer):
    """Whole-array weight block; constant index_map => single-buffer when possible."""
    idx = lambda b, n=arr.ndim: (0,) * n
    if single_buffer and hasattr(pl, "Buffered"):
        try:
            return pl.BlockSpec(arr.shape, idx, pipeline_mode=pl.Buffered(1))
        except TypeError:
            pass
    return pl.BlockSpec(arr.shape, idx)


# --------------------------------------------------------------- Pallas kernel
def encoder_layer_kernel(n_head, d_k, d_v, hk_pad, ffn_chunk,
                         x_ref, kpad_ref, npad_ref,
                         wqkv_ref, bqkv_ref, wfc_ref, bfc_ref,
                         ln1g_ref, ln1b_ref, w1_ref, b1_ref,
                         w2_ref, b2_ref, ln2g_ref, ln2b_ref,
                         out_ref):
    f32, bf16 = jnp.float32, jnp.bfloat16
    BB, L, D = x_ref.shape
    H = n_head
    hk, hv = H * d_k, H * d_v

    x = x_ref[...]                                    # (BB, L, D) f32
    x2 = x.reshape(BB * L, D)                         # fold batch into MXU M-dim
    npad = npad_ref[...].reshape(BB * L, 1)           # non-pad row mask
    kpad = kpad_ref[...]                              # (BB, 1, L) key-pad row
    neg_bias = kpad.reshape(1, BB, 1, L) * (-1e30)    # finite additive mask

    # ---- fused QKV projection: one bf16 MXU launch over all BB*L rows -------
    # (1/sqrt(d_k) is pre-folded into the Q columns of wqkv / bqkv.)
    qkv = jnp.dot(x2.astype(bf16), wqkv_ref[...],
                  preferred_element_type=f32) + bqkv_ref[...]

    # Segment starts are 128-lane aligned (wqkv padded at fusion time).
    q_all = qkv[:, :hk].reshape(BB, L, hk)
    k_all = qkv[:, hk_pad:hk_pad + hk].reshape(BB, L, hk)
    v_all = qkv[:, 2 * hk_pad:2 * hk_pad + hv].reshape(BB, L, hv)

    # ---- head-batched attention: one scores einsum, one softmax, one context
    # einsum over a (H*BB) batch dim — replaces the unrolled per-head loop.
    qh = jnp.stack([q_all[..., h * d_k:(h + 1) * d_k] for h in range(H)]
                   ).reshape(H * BB, L, d_k).astype(bf16)
    kh = jnp.stack([k_all[..., h * d_k:(h + 1) * d_k] for h in range(H)]
                   ).reshape(H * BB, L, d_k).astype(bf16)
    vh = jnp.stack([v_all[..., h * d_v:(h + 1) * d_v] for h in range(H)]
                   ).reshape(H * BB, L, d_v).astype(bf16)

    s = jnp.einsum("bqd,bkd->bqk", qh, kh, preferred_element_type=f32)
    s = s.reshape(H, BB, L, L) + neg_bias             # broadcast key-pad bias
    m = jnp.max(s, axis=-1, keepdims=True)
    e = jnp.exp(s - m)                                # f32 VPU/EUP
    attn = e * pl.reciprocal(jnp.sum(e, axis=-1, keepdims=True), approx=True)
    attn = attn.reshape(H * BB, L, L).astype(bf16)
    ctx = jnp.einsum("bqk,bkd->bqd", attn, vh, preferred_element_type=f32)
    ctx = ctx.reshape(H, BB, L, d_v)
    # heads become adjacent output columns -> ONE output projection
    ctx2 = jnp.concatenate([ctx[h] for h in range(H)], axis=-1).reshape(BB * L, hv)
    # TODO(synk): for L >= ~512 switch to a key-block online-softmax (flash-style
    # loop over key tiles) instead of materializing the (H*BB, L, L) scores.

    proj = jnp.dot(ctx2.astype(bf16), wfc_ref[...],
                   preferred_element_type=f32) + bfc_ref[...]

    # post-LN residual + non_pad mask (MultiHeadAttention / EncoderLayer), f32
    a = _layer_norm(proj + x2, ln1g_ref[...], ln1b_ref[...]) * npad

    # PositionwiseFeedForward: stream over d_inner so (BB*L, d_inner) h1 is
    # never fully resident. 1x1 conv == matmul, ReLU, 1x1 conv, post-LN resid.
    d_inner = w1_ref.shape[1]
    a_bf = a.astype(bf16)
    ffn = jnp.zeros((BB * L, D), f32)
    for c0 in range(0, d_inner, ffn_chunk):
        h1 = jnp.maximum(
            jnp.dot(a_bf, w1_ref[:, c0:c0 + ffn_chunk], preferred_element_type=f32)
            + b1_ref[:, c0:c0 + ffn_chunk], 0.0)
        ffn = ffn + jnp.dot(h1.astype(bf16), w2_ref[c0:c0 + ffn_chunk, :],
                            preferred_element_type=f32)
    ffn = ffn + b2_ref[...]
    # TODO(synk): at very large d_inner also stream w1/w2 weight blocks from HBM
    # (extra "arbitrary" grid axis or pltpu.emit_pipeline) instead of keeping
    # them fully resident.

    out = _layer_norm(ffn + a, ln2g_ref[...], ln2b_ref[...]) * npad
    out_ref[...] = out.reshape(BB, L, D)


def encoder_layer(x, key_pad3, non_pad, fp, *, n_head, d_k, d_v):
    """One encoder layer, tiled over the batch so the grid has >=2 steps."""
    B, L, D = x.shape
    BB = _pick_batch_block(B, L)
    hk_pad = fp["hk_pad"]
    d_inner = fp["w1"].shape[1]
    ffn_chunk = d_inner if (d_inner <= 512 or d_inner % 512) else 512

    kernel = functools.partial(encoder_layer_kernel,
                               n_head, d_k, d_v, hk_pad, ffn_chunk)
    weight_names = ("wqkv", "bqkv", "wfc", "bfc", "ln1g", "ln1b",
                    "w1", "b1", "w2", "b2", "ln2g", "ln2b")
    weights = tuple(fp[n] for n in weight_names)

    act_specs = [
        pl.BlockSpec((BB, L, D), lambda b: (b, 0, 0)),   # x (lane-dense L, D tile)
        pl.BlockSpec((BB, 1, L), lambda b: (b, 0, 0)),   # key-pad row, lane-dense
        pl.BlockSpec((BB, L, 1), lambda b: (b, 0, 0)),   # non-pad row mask
    ]

    def run(single_buffer_weights):
        return pl.pallas_call(
            kernel,
            out_shape=jax.ShapeDtypeStruct((B, L, D), jnp.float32),
            grid=(B // BB,),
            in_specs=act_specs + [_weight_spec(w, single_buffer_weights)
                                  for w in weights],
            out_specs=pl.BlockSpec((BB, L, D), lambda b: (b, 0, 0)),
            compiler_params=pltpu.CompilerParams(
                dimension_semantics=("parallel",),
                vmem_limit_bytes=_vmem_limit_bytes()),
        )(x, key_pad3, non_pad, *weights)

    try:
        return run(True)   # single-buffered weights (constant block index)
    except Exception:
        # TODO(synk): pl.Buffered(1) unsupported in this jax build — fall back to
        # default double-buffered weight blocks.
        return run(False)


def fuse_layer_params(p, d_k, mxu_dtype=jnp.bfloat16):
    """One-time parameter fusion (hoisted out of the forward pass):
    * concat Q/K/V weights into one wqkv with 128-lane-aligned segment starts,
    * fold 1/sqrt(d_k) into the Q columns (and bq),
    * cast MXU-feeding weights to bf16 (f32 accumulation in-kernel)."""
    D, hk = p["wq"].shape
    hv = p["wv"].shape[1]
    hk_p, hv_p = _round_up(hk, 128), _round_up(hv, 128)
    scale = 1.0 / (d_k ** 0.5)

    wqkv = jnp.zeros((D, 2 * hk_p + hv_p), mxu_dtype)
    wqkv = wqkv.at[:, :hk].set((p["wq"] * scale).astype(mxu_dtype))
    wqkv = wqkv.at[:, hk_p:hk_p + hk].set(p["wk"].astype(mxu_dtype))
    wqkv = wqkv.at[:, 2 * hk_p:2 * hk_p + hv].set(p["wv"].astype(mxu_dtype))
    bqkv = jnp.zeros((1, 2 * hk_p + hv_p), jnp.float32)
    bqkv = bqkv.at[:, :hk].set(p["bq"] * scale)
    bqkv = bqkv.at[:, hk_p:hk_p + hk].set(p["bk"])
    bqkv = bqkv.at[:, 2 * hk_p:2 * hk_p + hv].set(p["bv"])

    return {
        "wqkv": wqkv, "bqkv": bqkv, "hk_pad": hk_p,
        "wfc": p["wfc"].astype(mxu_dtype), "bfc": p["bfc"],
        "ln1g": p["ln1g"], "ln1b": p["ln1b"],
        "w1": p["w1"].astype(mxu_dtype), "b1": p["b1"],
        "w2": p["w2"].astype(mxu_dtype), "b2": p["b2"],
        "ln2g": p["ln2g"], "ln2b": p["ln2b"],
    }


# ---------------------------------------------------------- pure-JAX reference
def ref_encoder_layer(x, key_pad, npad, p, n_head, d_k, d_v):
    q_all = jnp.einsum("bld,de->ble", x, p["wq"]) + p["bq"]
    k_all = jnp.einsum("bld,de->ble", x, p["wk"]) + p["bk"]
    v_all = jnp.einsum("bld,de->ble", x, p["wv"]) + p["bv"]
    scale = 1.0 / (d_k ** 0.5)
    neg = key_pad[:, None, :] * (-1e30)
    proj = jnp.zeros_like(x)
    for h in range(n_head):
        qh = q_all[..., h * d_k:(h + 1) * d_k]
        kh = k_all[..., h * d_k:(h + 1) * d_k]
        vh = v_all[..., h * d_v:(h + 1) * d_v]
        s = jnp.einsum("bqd,bkd->bqk", qh, kh) * scale + neg
        attn = jax.nn.softmax(s, axis=-1)
        oh = jnp.einsum("bqk,bkd->bqd", attn, vh)
        proj = proj + jnp.einsum("bqd,de->bqe", oh, p["wfc"][h * d_v:(h + 1) * d_v])
    proj = proj + p["bfc"]
    a = _layer_norm(proj + x, p["ln1g"], p["ln1b"]) * npad
    h1 = jax.nn.relu(jnp.einsum("bld,de->ble", a, p["w1"]) + p["b1"])
    f = jnp.einsum("ble,ed->bld", h1, p["w2"]) + p["b2"]
    return _layer_norm(f + a, p["ln2g"], p["ln2b"]) * npad


# --------------------------------------------------------------- full encoder
def transf_encoder_forward(src_seq, src_pos, word_table, pos_table,
                           fused_layer_params, *, n_head, d_k, d_v):
    # get_attn_key_pad_mask row (lane-dense (B,1,L)) / get_non_pad_mask (B,L,1):
    # only O(B*L) is ever shipped to the kernel, never the (B,L,L) mask.
    key_pad3 = (src_seq == PAD).astype(jnp.float32)[:, None, :]
    non_pad = (src_seq != PAD).astype(jnp.float32)[:, :, None]

    enc_output = word_table[src_seq] + pos_table[src_pos]          # (B, L, D)

    enc_outputs = []
    for fp in fused_layer_params:
        enc_output = encoder_layer(enc_output, key_pad3, non_pad, fp,
                                   n_head=n_head, d_k=d_k, d_v=d_v)
        enc_outputs.append(enc_output)

    # hidden = [layer_output.transpose(0, 1)[0] ...]  -> first timestep per layer
    hidden = [lo[:, 0, :] for lo in enc_outputs]
    return enc_output, hidden, enc_outputs
    # TODO(synk): on v5e, carry inter-layer activations in bf16 (halves the
    # residual-path HBM traffic); kept f32 here for tighter reference checking.


# ---------------------------------------------------------------------- main
def init_layer_params(key, d_model, n_head, d_k, d_v, d_inner):
    ks = jax.random.split(key, 12)
    s = 0.05
    n = lambda k, shape: (jax.random.normal(k, shape, jnp.float32) * s)
    return {
        "wq": n(ks[0], (d_model, n_head * d_k)), "bq": n(ks[1], (1, n_head * d_k)),
        "wk": n(ks[2], (d_model, n_head * d_k)), "bk": n(ks[3], (1, n_head * d_k)),
        "wv": n(ks[4], (d_model, n_head * d_v)), "bv": n(ks[5], (1, n_head * d_v)),
        "wfc": n(ks[6], (n_head * d_v, d_model)), "bfc": n(ks[7], (1, d_model)),
        "ln1g": jnp.ones((1, d_model), jnp.float32),
        "ln1b": jnp.zeros((1, d_model), jnp.float32),
        "w1": n(ks[8], (d_model, d_inner)), "b1": n(ks[9], (1, d_inner)),
        "w2": n(ks[10], (d_inner, d_model)), "b2": n(ks[11], (1, d_model)),
        "ln2g": jnp.ones((1, d_model), jnp.float32),
        "ln2b": jnp.zeros((1, d_model), jnp.float32),
    }


if __name__ == "__main__":
    # small config consistent with the module
    n_vocab, d_model, len_max_seq = 100, 32, 16
    n_layer, d_inner, n_head, d_k, d_v = 2, 64, 4, 8, 8
    B, L = 2, 8

    key = jax.random.PRNGKey(0)
    k_emb, k_layers = jax.random.split(key)

    # word embedding (padding_idx=0 zeroed) + frozen sinusoid positional table
    word_table = jax.random.normal(k_emb, (n_vocab, d_model), jnp.float32) * 0.1
    word_table = word_table.at[PAD].set(0.0)
    pos_table = get_sinusoid_encoding_table(len_max_seq + 5, d_model)
    # invariant the all-pad-row neutralization relies on (see perf review)
    assert bool(jnp.all(word_table[PAD] == 0.0))

    layer_keys = jax.random.split(k_layers, n_layer)
    layer_params = [init_layer_params(k, d_model, n_head, d_k, d_v, d_inner)
                    for k in layer_keys]
    # weight fusion / bf16 casting happens ONCE at parameter-load time
    fused_layer_params = [fuse_layer_params(p, d_k) for p in layer_params]

    # deterministic inputs: token ids (0 = PAD) and positions (0 at PAD)
    src_seq = jnp.array([[5, 7, 3, 9, 2, 4, 0, 0],
                         [11, 6, 8, 1, 0, 0, 0, 0]], dtype=jnp.int32)
    pos_ids = jnp.arange(1, L + 1, dtype=jnp.int32)[None, :]
    src_pos = jnp.where(src_seq != PAD, pos_ids, 0)

    enc_output, hidden, enc_outputs = transf_encoder_forward(
        src_seq, src_pos, word_table, pos_table, fused_layer_params,
        n_head=n_head, d_k=d_k, d_v=d_v)
    jax.block_until_ready(enc_output)
    jax.block_until_ready(hidden)

    # sanity check against a pure-JAX f32 reference of the same math
    # (kernel feeds the MXU bf16 with f32 accumulation -> loosened tolerance)
    key_pad2 = (src_seq == PAD).astype(jnp.float32)
    non_pad = (src_seq != PAD).astype(jnp.float32)[:, :, None]
    x_ref = word_table[src_seq] + pos_table[src_pos]
    for p in layer_params:
        x_ref = ref_encoder_layer(x_ref, key_pad2, non_pad, p, n_head, d_k, d_v)
    assert bool(jnp.all(jnp.isfinite(enc_output))), "non-finite values in output"
    assert jnp.allclose(enc_output, x_ref, rtol=5e-2, atol=5e-2), "mismatch vs reference"
    assert enc_output.shape == (B, L, d_model)
    assert len(hidden) == n_layer and hidden[0].shape == (B, d_model)

    # TODO(synk): pretrained BERT/GPT2 branches, feat_embs (feat_vocab) and the
    # user-defined slf_attn_mask branch are not exercised by the default config
    # and are not implemented here.
    print("KERNEL_OK")
</pallas_src>

<mosaic_0001>
module attributes {stable_mosaic.version = 11 : i64} {
  func.func @encoder_layer_kernel(%arg0: i32, %arg1: memref<1x8x32xf32, #tpu.memory_space<vmem>>, %arg2: memref<1x1x8xf32, #tpu.memory_space<vmem>>, %arg3: memref<1x8x1xf32, #tpu.memory_space<vmem>>, %arg4: memref<32x384xbf16, #tpu.memory_space<vmem>>, %arg5: memref<1x384xf32, #tpu.memory_space<vmem>>, %arg6: memref<32x32xbf16, #tpu.memory_space<vmem>>, %arg7: memref<1x32xf32, #tpu.memory_space<vmem>>, %arg8: memref<1x32xf32, #tpu.memory_space<vmem>>, %arg9: memref<1x32xf32, #tpu.memory_space<vmem>>, %arg10: memref<32x64xbf16, #tpu.memory_space<vmem>>, %arg11: memref<1x64xf32, #tpu.memory_space<vmem>>, %arg12: memref<64x32xbf16, #tpu.memory_space<vmem>>, %arg13: memref<1x32xf32, #tpu.memory_space<vmem>>, %arg14: memref<1x32xf32, #tpu.memory_space<vmem>>, %arg15: memref<1x32xf32, #tpu.memory_space<vmem>>, %arg16: memref<1x8x32xf32, #tpu.memory_space<vmem>>) attributes {dimension_semantics = [#tpu.dimension_semantics<parallel>], iteration_bounds = array<i64: 2>, scalar_prefetch = 0 : i64, scratch_operands = 0 : i64, tpu.core_type = #tpu.core_type<tc>, window_params = [{transform_indices = @transform_0, window_bounds = array<i64: 1, 8, 32>}, {transform_indices = @transform_1, window_bounds = array<i64: 1, 1, 8>}, {transform_indices = @transform_2, window_bounds = array<i64: 1, 8, 1>}, {pipeline_mode = #tpu.pipeline_mode<synchronous>, transform_indices = @transform_3, window_bounds = array<i64: 32, 384>}, {pipeline_mode = #tpu.pipeline_mode<synchronous>, transform_indices = @transform_4, window_bounds = array<i64: 1, 384>}, {pipeline_mode = #tpu.pipeline_mode<synchronous>, transform_indices = @transform_5, window_bounds = array<i64: 32, 32>}, {pipeline_mode = #tpu.pipeline_mode<synchronous>, transform_indices = @transform_6, window_bounds = array<i64: 1, 32>}, {pipeline_mode = #tpu.pipeline_mode<synchronous>, transform_indices = @transform_7, window_bounds = array<i64: 1, 32>}, {pipeline_mode = #tpu.pipeline_mode<synchronous>, transform_indices = @transform_8, window_bounds = array<i64: 1, 32>}, {pipeline_mode = #tpu.pipeline_mode<synchronous>, transform_indices = @transform_9, window_bounds = array<i64: 32, 64>}, {pipeline_mode = #tpu.pipeline_mode<synchronous>, transform_indices = @transform_10, window_bounds = array<i64: 1, 64>}, {pipeline_mode = #tpu.pipeline_mode<synchronous>, transform_indices = @transform_11, window_bounds = array<i64: 64, 32>}, {pipeline_mode = #tpu.pipeline_mode<synchronous>, transform_indices = @transform_12, window_bounds = array<i64: 1, 32>}, {pipeline_mode = #tpu.pipeline_mode<synchronous>, transform_indices = @transform_13, window_bounds = array<i64: 1, 32>}, {pipeline_mode = #tpu.pipeline_mode<synchronous>, transform_indices = @transform_14, window_bounds = array<i64: 1, 32>}, {transform_indices = @transform_15, window_bounds = array<i64: 1, 8, 32>}]} {
    %c0 = arith.constant 0 : index
    %c0_0 = arith.constant 0 : index
    %c0_1 = arith.constant 0 : index
    %0 = vector.load %arg1[%c0, %c0_0, %c0_1] : memref<1x8x32xf32, #tpu.memory_space<vmem>>, vector<1x8x32xf32>
    %1 = vector.shape_cast %0 : vector<1x8x32xf32> to vector<8x32xf32>
    %c0_2 = arith.constant 0 : index
    %c0_3 = arith.constant 0 : index
    %c0_4 = arith.constant 0 : index
    %2 = vector.load %arg3[%c0_2, %c0_3, %c0_4] : memref<1x8x1xf32, #tpu.memory_space<vmem>>, vector<1x8x1xf32>
    %3 = vector.shape_cast %2 : vector<1x8x1xf32> to vector<8x1xf32>
    %c0_5 = arith.constant 0 : index
    %c0_6 = arith.constant 0 : index
    %c0_7 = arith.constant 0 : index
    %4 = vector.load %arg2[%c0_5, %c0_6, %c0_7] : memref<1x1x8xf32, #tpu.memory_space<vmem>>, vector<1x1x8xf32>
    %5 = vector.shape_cast %4 : vector<1x1x8xf32> to vector<1x1x1x8xf32>
    %cst = arith.constant -1.000000e+30 : f32
    %6 = vector.broadcast %cst : f32 to vector<1x1x1x8xf32>
    %7 = arith.mulf %5, %6 : vector<1x1x1x8xf32>
    %8 = arith.truncf %1 : vector<8x32xf32> to vector<8x32xbf16>
    %c0_8 = arith.constant 0 : index
    %c0_9 = arith.constant 0 : index
    %9 = vector.load %arg4[%c0_8, %c0_9] : memref<32x384xbf16, #tpu.memory_space<vmem>>, vector<32x384xbf16>
    %cst_10 = arith.constant dense<0.000000e+00> : vector<8x384xf32>
    %10 = tpu.matmul %8, %9, %cst_10 {dimension_numbers = #tpu.dot_dimension_numbers<[1], [0], [0], [1], [0, 0, 1, 1], [], []>} : vector<8x32xbf16>, vector<32x384xbf16>, vector<8x384xf32> -> vector<8x384xf32>
    %c0_11 = arith.constant 0 : index
    %c0_12 = arith.constant 0 : index
    %11 = vector.load %arg5[%c0_11, %c0_12] : memref<1x384xf32, #tpu.memory_space<vmem>>, vector<1x384xf32>
    %12 = vector.broadcast %11 : vector<1x384xf32> to vector<8x384xf32>
    %13 = arith.addf %10, %12 : vector<8x384xf32>
    %14 = vector.extract_strided_slice %13 {offsets = [0, 0], sizes = [8, 32], strides = [1, 1]} : vector<8x384xf32> to vector<8x32xf32>
    %15 = vector.shape_cast %14 : vector<8x32xf32> to vector<1x8x32xf32>
    %16 = vector.extract_strided_slice %13 {offsets = [0, 128], sizes = [8, 32], strides = [1, 1]} : vector<8x384xf32> to vector<8x32xf32>
    %17 = vector.shape_cast %16 : vector<8x32xf32> to vector<1x8x32xf32>
    %18 = vector.extract_strided_slice %13 {offsets = [0, 256], sizes = [8, 32], strides = [1, 1]} : vector<8x384xf32> to vector<8x32xf32>
    %19 = vector.shape_cast %18 : vector<8x32xf32> to vector<1x8x32xf32>
    %20 = vector.extract_strided_slice %15 {offsets = [0, 0, 0], sizes = [1, 8, 8], strides = [1, 1, 1]} : vector<1x8x32xf32> to vector<1x8x8xf32>
    %21 = vector.extract_strided_slice %15 {offsets = [0, 0, 8], sizes = [1, 8, 8], strides = [1, 1, 1]} : vector<1x8x32xf32> to vector<1x8x8xf32>
    %22 = vector.extract_strided_slice %15 {offsets = [0, 0, 16], sizes = [1, 8, 8], strides = [1, 1, 1]} : vector<1x8x32xf32> to vector<1x8x8xf32>
    %23 = vector.extract_strided_slice %15 {offsets = [0, 0, 24], sizes = [1, 8, 8], strides = [1, 1, 1]} : vector<1x8x32xf32> to vector<1x8x8xf32>
    %24 = vector.shape_cast %20 : vector<1x8x8xf32> to vector<1x1x8x8xf32>
    %25 = vector.shape_cast %21 : vector<1x8x8xf32> to vector<1x1x8x8xf32>
    %26 = vector.shape_cast %22 : vector<1x8x8xf32> to vector<1x1x8x8xf32>
    %27 = vector.shape_cast %23 : vector<1x8x8xf32> to vector<1x1x8x8xf32>
    %28 = tpu.concatenate %24, %25, %26, %27 in 0 : vector<1x1x8x8xf32>, vector<1x1x8x8xf32>, vector<1x1x8x8xf32>, vector<1x1x8x8xf32> -> vector<4x1x8x8xf32>
    %29 = vector.shape_cast %28 : vector<4x1x8x8xf32> to vector<4x8x8xf32>
    %30 = arith.truncf %29 : vector<4x8x8xf32> to vector<4x8x8xbf16>
    %31 = vector.extract_strided_slice %17 {offsets = [0, 0, 0], sizes = [1, 8, 8], strides = [1, 1, 1]} : vector<1x8x32xf32> to vector<1x8x8xf32>
    %32 = vector.extract_strided_slice %17 {offsets = [0, 0, 8], sizes = [1, 8, 8], strides = [1, 1, 1]} : vector<1x8x32xf32> to vector<1x8x8xf32>
    %33 = vector.extract_strided_slice %17 {offsets = [0, 0, 16], sizes = [1, 8, 8], strides = [1, 1, 1]} : vector<1x8x32xf32> to vector<1x8x8xf32>
    %34 = vector.extract_strided_slice %17 {offsets = [0, 0, 24], sizes = [1, 8, 8], strides = [1, 1, 1]} : vector<1x8x32xf32> to vector<1x8x8xf32>
    %35 = vector.shape_cast %31 : vector<1x8x8xf32> to vector<1x1x8x8xf32>
    %36 = vector.shape_cast %32 : vector<1x8x8xf32> to vector<1x1x8x8xf32>
    %37 = vector.shape_cast %33 : vector<1x8x8xf32> to vector<1x1x8x8xf32>
    %38 = vector.shape_cast %34 : vector<1x8x8xf32> to vector<1x1x8x8xf32>
    %39 = tpu.concatenate %35, %36, %37, %38 in 0 : vector<1x1x8x8xf32>, vector<1x1x8x8xf32>, vector<1x1x8x8xf32>, vector<1x1x8x8xf32> -> vector<4x1x8x8xf32>
    %40 = vector.shape_cast %39 : vector<4x1x8x8xf32> to vector<4x8x8xf32>
    %41 = arith.truncf %40 : vector<4x8x8xf32> to vector<4x8x8xbf16>
    %42 = vector.extract_strided_slice %19 {offsets = [0, 0, 0], sizes = [1, 8, 8], strides = [1, 1, 1]} : vector<1x8x32xf32> to vector<1x8x8xf32>
    %43 = vector.extract_strided_slice %19 {offsets = [0, 0, 8], sizes = [1, 8, 8], strides = [1, 1, 1]} : vector<1x8x32xf32> to vector<1x8x8xf32>
    %44 = vector.extract_strided_slice %19 {offsets = [0, 0, 16], sizes = [1, 8, 8], strides = [1, 1, 1]} : vector<1x8x32xf32> to vector<1x8x8xf32>
    %45 = vector.extract_strided_slice %19 {offsets = [0, 0, 24], sizes = [1, 8, 8], strides = [1, 1, 1]} : vector<1x8x32xf32> to vector<1x8x8xf32>
    %46 = vector.shape_cast %42 : vector<1x8x8xf32> to vector<1x1x8x8xf32>
    %47 = vector.shape_cast %43 : vector<1x8x8xf32> to vector<1x1x8x8xf32>
    %48 = vector.shape_cast %44 : vector<1x8x8xf32> to vector<1x1x8x8xf32>
    %49 = vector.shape_cast %45 : vector<1x8x8xf32> to vector<1x1x8x8xf32>
    %50 = tpu.concatenate %46, %47, %48, %49 in 0 : vector<1x1x8x8xf32>, vector<1x1x8x8xf32>, vector<1x1x8x8xf32>, vector<1x1x8x8xf32> -> vector<4x1x8x8xf32>
    %51 = vector.shape_cast %50 : vector<4x1x8x8xf32> to vector<4x8x8xf32>
    %52 = arith.truncf %51 : vector<4x8x8xf32> to vector<4x8x8xbf16>
    "tpu.trace_start"() <{level = 10 : i32, message = "bqd,bkd->bqk"}> : () -> ()
    %cst_13 = arith.constant dense<0.000000e+00> : vector<4x8x8xf32>
    %53 = tpu.matmul %30, %41, %cst_13 {dimension_numbers = #tpu.dot_dimension_numbers<[2], [2], [1], [1], [0, 0, 0, 1, 1, 1], [0], [0]>} : vector<4x8x8xbf16>, vector<4x8x8xbf16>, vector<4x8x8xf32> -> vector<4x8x8xf32>
    "tpu.trace_stop"() : () -> ()
    %54 = vector.shape_cast %53 : vector<4x8x8xf32> to vector<4x1x8x8xf32>
    %55 = vector.broadcast %7 : vector<1x1x1x8xf32> to vector<4x1x8x8xf32>
    %56 = arith.addf %54, %55 : vector<4x1x8x8xf32>
    %cst_14 = arith.constant dense<0xFF800000> : vector<4x1x8xf32>
    %57 = vector.multi_reduction <maximumf>, %56, %cst_14 [3] : vector<4x1x8x8xf32> to vector<4x1x8xf32>
    %58 = vector.shape_cast %57 : vector<4x1x8xf32> to vector<4x1x8x1xf32>
    %59 = vector.broadcast %58 : vector<4x1x8x1xf32> to vector<4x1x8x8xf32>
    %60 = arith.subf %56, %59 : vector<4x1x8x8xf32>
    %61 = math.exp %60 : vector<4x1x8x8xf32>
    %cst_15 = arith.constant dense<0.000000e+00> : vector<4x1x8xf32>
    %62 = vector.multi_reduction <add>, %61, %cst_15 [3] : vector<4x1x8x8xf32> to vector<4x1x8xf32>
    %63 = vector.shape_cast %62 : vector<4x1x8xf32> to vector<4x1x8x1xf32>
    %64 = tpu.reciprocal %63 {approx = true} : vector<4x1x8x1xf32> -> vector<4x1x8x1xf32>
    %65 = vector.broadcast %64 : vector<4x1x8x1xf32> to vector<4x1x8x8xf32>
    %66 = arith.mulf %61, %65 : vector<4x1x8x8xf32>
    %67 = vector.shape_cast %66 : vector<4x1x8x8xf32> to vector<4x8x8xf32>
    %68 = arith.truncf %67 : vector<4x8x8xf32> to vector<4x8x8xbf16>
    "tpu.trace_start"() <{level = 10 : i32, message = "bqk,bkd->bqd"}> : () -> ()
    %cst_16 = arith.constant dense<0.000000e+00> : vector<4x8x8xf32>
    %69 = tpu.matmul %68, %52, %cst_16 {dimension_numbers = #tpu.dot_dimension_numbers<[2], [1], [1], [2], [0, 0, 0, 1, 1, 2], [0], [0]>} : vector<4x8x8xbf16>, vector<4x8x8xbf16>, vector<4x8x8xf32> -> vector<4x8x8xf32>
    "tpu.trace_stop"() : () -> ()
    %70 = vector.shape_cast %69 : vector<4x8x8xf32> to vector<4x1x8x8xf32>
    %71 = vector.extract_strided_slice %70 {offsets = [0, 0, 0, 0], sizes = [1, 1, 8, 8], strides = [1, 1, 1, 1]} : vector<4x1x8x8xf32> to vector<1x1x8x8xf32>
    %72 = vector.shape_cast %71 : vector<1x1x8x8xf32> to vector<1x8x8xf32>
    %73 = vector.extract_strided_slice %70 {offsets = [1, 0, 0, 0], sizes = [1, 1, 8, 8], strides = [1, 1, 1, 1]} : vector<4x1x8x8xf32> to vector<1x1x8x8xf32>
    %74 = vector.shape_cast %73 : vector<1x1x8x8xf32> to vector<1x8x8xf32>
    %75 = vector.extract_strided_slice %70 {offsets = [2, 0, 0, 0], sizes = [1, 1, 8, 8], strides = [1, 1, 1, 1]} : vector<4x1x8x8xf32> to vector<1x1x8x8xf32>
    %76 = vector.shape_cast %75 : vector<1x1x8x8xf32> to vector<1x8x8xf32>
    %77 = vector.extract_strided_slice %70 {offsets = [3, 0, 0, 0], sizes = [1, 1, 8, 8], strides = [1, 1, 1, 1]} : vector<4x1x8x8xf32> to vector<1x1x8x8xf32>
    %78 = vector.shape_cast %77 : vector<1x1x8x8xf32> to vector<1x8x8xf32>
    %79 = tpu.concatenate %72, %74, %76, %78 in 2 : vector<1x8x8xf32>, vector<1x8x8xf32>, vector<1x8x8xf32>, vector<1x8x8xf32> -> vector<1x8x32xf32>
    %80 = vector.shape_cast %79 : vector<1x8x32xf32> to vector<8x32xf32>
    %81 = arith.truncf %80 : vector<8x32xf32> to vector<8x32xbf16>
    %c0_17 = arith.constant 0 : index
    %c0_18 = arith.constant 0 : index
    %82 = vector.load %arg6[%c0_17, %c0_18] : memref<32x32xbf16, #tpu.memory_space<vmem>>, vector<32x32xbf16>
    %cst_19 = arith.constant dense<0.000000e+00> : vector<8x32xf32>
    %83 = tpu.matmul %81, %82, %cst_19 {dimension_numbers = #tpu.dot_dimension_numbers<[1], [0], [0], [1], [0, 0, 1, 1], [], []>} : vector<8x32xbf16>, vector<32x32xbf16>, vector<8x32xf32> -> vector<8x32xf32>
    %c0_20 = arith.constant 0 : index
    %c0_21 = arith.constant 0 : index
    %84 = vector.load %arg7[%c0_20, %c0_21] : memref<1x32xf32, #tpu.memory_space<vmem>>, vector<1x32xf32>
    %85 = vector.broadcast %84 : vector<1x32xf32> to vector<8x32xf32>
    %86 = arith.addf %83, %85 : vector<8x32xf32>
    %87 = arith.addf %86, %1 : vector<8x32xf32>
    %c0_22 = arith.constant 0 : index
    %c0_23 = arith.constant 0 : index
    %88 = vector.load %arg8[%c0_22, %c0_23] : memref<1x32xf32, #tpu.memory_space<vmem>>, vector<1x32xf32>
    %c0_24 = arith.constant 0 : index
    %c0_25 = arith.constant 0 : index
    %89 = vector.load %arg9[%c0_24, %c0_25] : memref<1x32xf32, #tpu.memory_space<vmem>>, vector<1x32xf32>
    %cst_26 = arith.constant dense<0.000000e+00> : vector<8xf32>
    %90 = vector.multi_reduction <add>, %87, %cst_26 [1] : vector<8x32xf32> to vector<8xf32>
    %91 = vector.shape_cast %90 : vector<8xf32> to vector<8x1xf32>
    %cst_27 = arith.constant 3.200000e+01 : f32
    %92 = vector.broadcast %cst_27 : f32 to vector<8x1xf32>
    %93 = arith.divf %91, %92 : vector<8x1xf32>
    %94 = vector.broadcast %93 : vector<8x1xf32> to vector<8x32xf32>
    %95 = arith.subf %87, %94 : vector<8x32xf32>
    %96 = arith.mulf %95, %95 : vector<8x32xf32>
    %cst_28 = arith.constant dense<0.000000e+00> : vector<8xf32>
    %97 = vector.multi_reduction <add>, %96, %cst_28 [1] : vector<8x32xf32> to vector<8xf32>
    %98 = vector.shape_cast %97 : vector<8xf32> to vector<8x1xf32>
    %cst_29 = arith.constant 3.200000e+01 : f32
    %99 = vector.broadcast %cst_29 : f32 to vector<8x1xf32>
    %100 = arith.divf %98, %99 : vector<8x1xf32>
    %101 = vector.broadcast %93 : vector<8x1xf32> to vector<8x32xf32>
    %102 = arith.subf %87, %101 : vector<8x32xf32>
    %cst_30 = arith.constant 9.99999974E-6 : f32
    %103 = vector.broadcast %cst_30 : f32 to vector<8x1xf32>
    %104 = arith.addf %100, %103 : vector<8x1xf32>
    %105 = math.rsqrt %104 : vector<8x1xf32>
    %106 = vector.broadcast %105 : vector<8x1xf32> to vector<8x32xf32>
    %107 = arith.mulf %102, %106 : vector<8x32xf32>
    %108 = vector.broadcast %88 : vector<1x32xf32> to vector<8x32xf32>
    %109 = arith.mulf %107, %108 : vector<8x32xf32>
    %110 = vector.broadcast %89 : vector<1x32xf32> to vector<8x32xf32>
    %111 = arith.addf %109, %110 : vector<8x32xf32>
    %112 = vector.broadcast %3 : vector<8x1xf32> to vector<8x32xf32>
    %113 = arith.mulf %111, %112 : vector<8x32xf32>
    %114 = arith.truncf %113 : vector<8x32xf32> to vector<8x32xbf16>
    %cst_31 = arith.constant 0.000000e+00 : f32
    %115 = vector.broadcast %cst_31 : f32 to vector<8x32xf32>
    %c0_32 = arith.constant 0 : index
    %c0_33 = arith.constant 0 : index
    %116 = vector.load %arg10[%c0_32, %c0_33] : memref<32x64xbf16, #tpu.memory_space<vmem>>, vector<32x64xbf16>
    %cst_34 = arith.constant dense<0.000000e+00> : vector<8x64xf32>
    %117 = tpu.matmul %114, %116, %cst_34 {dimension_numbers = #tpu.dot_dimension_numbers<[1], [0], [0], [1], [0, 0, 1, 1], [], []>} : vector<8x32xbf16>, vector<32x64xbf16>, vector<8x64xf32> -> vector<8x64xf32>
    %c0_35 = arith.constant 0 : index
    %c0_36 = arith.constant 0 : index
    %118 = vector.load %arg11[%c0_35, %c0_36] : memref<1x64xf32, #tpu.memory_space<vmem>>, vector<1x64xf32>
    %119 = vector.broadcast %118 : vector<1x64xf32> to vector<8x64xf32>
    %120 = arith.addf %117, %119 : vector<8x64xf32>
    %cst_37 = arith.constant 0.000000e+00 : f32
    %121 = vector.broadcast %cst_37 : f32 to vector<8x64xf32>
    %122 = arith.maximumf %120, %121 : vector<8x64xf32>
    %123 = arith.truncf %122 : vector<8x64xf32> to vector<8x64xbf16>
    %c0_38 = arith.constant 0 : index
    %c0_39 = arith.constant 0 : index
    %124 = vector.load %arg12[%c0_38, %c0_39] : memref<64x32xbf16, #tpu.memory_space<vmem>>, vector<64x32xbf16>
    %cst_40 = arith.constant dense<0.000000e+00> : vector<8x32xf32>
    %125 = tpu.matmul %123, %124, %cst_40 {dimension_numbers = #tpu.dot_dimension_numbers<[1], [0], [0], [1], [0, 0, 1, 1], [], []>} : vector<8x64xbf16>, vector<64x32xbf16>, vector<8x32xf32> -> vector<8x32xf32>
    %126 = arith.addf %115, %125 : vector<8x32xf32>
    %c0_41 = arith.constant 0 : index
    %c0_42 = arith.constant 0 : index
    %127 = vector.load %arg13[%c0_41, %c0_42] : memref<1x32xf32, #tpu.memory_space<vmem>>, vector<1x32xf32>
    %128 = vector.broadcast %127 : vector<1x32xf32> to vector<8x32xf32>
    %129 = arith.addf %126, %128 : vector<8x32xf32>
    %130 = arith.addf %129, %113 : vector<8x32xf32>
    %c0_43 = arith.constant 0 : index
    %c0_44 = arith.constant 0 : index
    %131 = vector.load %arg14[%c0_43, %c0_44] : memref<1x32xf32, #tpu.memory_space<vmem>>, vector<1x32xf32>
    %c0_45 = arith.constant 0 : index
    %c0_46 = arith.constant 0 : index
    %132 = vector.load %arg15[%c0_45, %c0_46] : memref<1x32xf32, #tpu.memory_space<vmem>>, vector<1x32xf32>
    %cst_47 = arith.constant dense<0.000000e+00> : vector<8xf32>
    %133 = vector.multi_reduction <add>, %130, %cst_47 [1] : vector<8x32xf32> to vector<8xf32>
    %134 = vector.shape_cast %133 : vector<8xf32> to vector<8x1xf32>
    %cst_48 = arith.constant 3.200000e+01 : f32
    %135 = vector.broadcast %cst_48 : f32 to vector<8x1xf32>
    %136 = arith.divf %134, %135 : vector<8x1xf32>
    %137 = vector.broadcast %136 : vector<8x1xf32> to vector<8x32xf32>
    %138 = arith.subf %130, %137 : vector<8x32xf32>
    %139 = arith.mulf %138, %138 : vector<8x32xf32>
    %cst_49 = arith.constant dense<0.000000e+00> : vector<8xf32>
    %140 = vector.multi_reduction <add>, %139, %cst_49 [1] : vector<8x32xf32> to vector<8xf32>
    %141 = vector.shape_cast %140 : vector<8xf32> to vector<8x1xf32>
    %cst_50 = arith.constant 3.200000e+01 : f32
    %142 = vector.broadcast %cst_50 : f32 to vector<8x1xf32>
    %143 = arith.divf %141, %142 : vector<8x1xf32>
    %144 = vector.broadcast %136 : vector<8x1xf32> to vector<8x32xf32>
    %145 = arith.subf %130, %144 : vector<8x32xf32>
    %cst_51 = arith.constant 9.99999974E-6 : f32
    %146 = vector.broadcast %cst_51 : f32 to vector<8x1xf32>
    %147 = arith.addf %143, %146 : vector<8x1xf32>
    %148 = math.rsqrt %147 : vector<8x1xf32>
    %149 = vector.broadcast %148 : vector<8x1xf32> to vector<8x32xf32>
    %150 = arith.mulf %145, %149 : vector<8x32xf32>
    %151 = vector.broadcast %131 : vector<1x32xf32> to vector<8x32xf32>
    %152 = arith.mulf %150, %151 : vector<8x32xf32>
    %153 = vector.broadcast %132 : vector<1x32xf32> to vector<8x32xf32>
    %154 = arith.addf %152, %153 : vector<8x32xf32>
    %155 = vector.broadcast %3 : vector<8x1xf32> to vector<8x32xf32>
    %156 = arith.mulf %154, %155 : vector<8x32xf32>
    %157 = vector.shape_cast %156 : vector<8x32xf32> to vector<1x8x32xf32>
    %c0_52 = arith.constant 0 : index
    %c0_53 = arith.constant 0 : index
    %c0_54 = arith.constant 0 : index
    %158 = vector.load %arg16[%c0_52, %c0_53, %c0_54] : memref<1x8x32xf32, #tpu.memory_space<vmem>>, vector<1x8x32xf32>
    tpu.vector_store %arg16[%c0_52, %c0_53, %c0_54], %157 {strides = array<i32>} : memref<1x8x32xf32, #tpu.memory_space<vmem>>, vector<1x8x32xf32>,
    return
  }
  func.func @transform_0(%arg0: i32) -> (i32, i32, i32) {
    %c0_i32 = arith.constant 0 : i32
    %c0_i32_0 = arith.constant 0 : i32
    %c0_i32_1 = arith.constant 0 : i32
    return %arg0, %c0_i32, %c0_i32_0 : i32, i32, i32
  }
  func.func @transform_1(%arg0: i32) -> (i32, i32, i32) {
    %c0_i32 = arith.constant 0 : i32
    %c0_i32_0 = arith.constant 0 : i32
    %c0_i32_1 = arith.constant 0 : i32
    return %arg0, %c0_i32, %c0_i32_0 : i32, i32, i32
  }
  func.func @transform_2(%arg0: i32) -> (i32, i32, i32) {
    %c0_i32 = arith.constant 0 : i32
    %c0_i32_0 = arith.constant 0 : i32
    %c0_i32_1 = arith.constant 0 : i32
    return %arg0, %c0_i32, %c0_i32_0 : i32, i32, i32
  }
  func.func @transform_3(%arg0: i32) -> (i32, i32) {
    %c0_i32 = arith.constant 0 : i32
    %c0_i32_0 = arith.constant 0 : i32
    %c0_i32_1 = arith.constant 0 : i32
    return %c0_i32, %c0_i32_0 : i32, i32
  }
  func.func @transform_4(%arg0: i32) -> (i32, i32) {
    %c0_i32 = arith.constant 0 : i32
    %c0_i32_0 = arith.constant 0 : i32
    %c0_i32_1 = arith.constant 0 : i32
    return %c0_i32, %c0_i32_0 : i32, i32
  }
  func.func @transform_5(%arg0: i32) -> (i32, i32) {
    %c0_i32 = arith.constant 0 : i32
    %c0_i32_0 = arith.constant 0 : i32
    %c0_i32_1 = arith.constant 0 : i32
    return %c0_i32, %c0_i32_0 : i32, i32
  }
  func.func @transform_6(%arg0: i32) -> (i32, i32) {
    %c0_i32 = arith.constant 0 : i32
    %c0_i32_0 = arith.constant 0 : i32
    %c0_i32_1 = arith.constant 0 : i32
    return %c0_i32, %c0_i32_0 : i32, i32
  }
  func.func @transform_7(%arg0: i32) -> (i32, i32) {
    %c0_i32 = arith.constant 0 : i32
    %c0_i32_0 = arith.constant 0 : i32
    %c0_i32_1 = arith.constant 0 : i32
    return %c0_i32, %c0_i32_0 : i32, i32
  }
  func.func @transform_8(%arg0: i32) -> (i32, i32) {
    %c0_i32 = arith.constant 0 : i32
    %c0_i32_0 = arith.constant 0 : i32
    %c0_i32_1 = arith.constant 0 : i32
    return %c0_i32, %c0_i32_0 : i32, i32
  }
  func.func @transform_9(%arg0: i32) -> (i32, i32) {
    %c0_i32 = arith.constant 0 : i32
    %c0_i32_0 = arith.constant 0 : i32
    %c0_i32_1 = arith.constant 0 : i32
    return %c0_i32, %c0_i32_0 : i32, i32
  }
  func.func @transform_10(%arg0: i32) -> (i32, i32) {
    %c0_i32 = arith.constant 0 : i32
    %c0_i32_0 = arith.constant 0 : i32
    %c0_i32_1 = arith.constant 0 : i32
    return %c0_i32, %c0_i32_0 : i32, i32
  }
  func.func @transform_11(%arg0: i32) -> (i32, i32) {
    %c0_i32 = arith.constant 0 : i32
    %c0_i32_0 = arith.constant 0 : i32
    %c0_i32_1 = arith.constant 0 : i32
    return %c0_i32, %c0_i32_0 : i32, i32
  }
  func.func @transform_12(%arg0: i32) -> (i32, i32) {
    %c0_i32 = arith.constant 0 : i32
    %c0_i32_0 = arith.constant 0 : i32
    %c0_i32_1 = arith.constant 0 : i32
    return %c0_i32, %c0_i32_0 : i32, i32
  }
  func.func @transform_13(%arg0: i32) -> (i32, i32) {
    %c0_i32 = arith.constant 0 : i32
    %c0_i32_0 = arith.constant 0 : i32
    %c0_i32_1 = arith.constant 0 : i32
    return %c0_i32, %c0_i32_0 : i32, i32
  }
  func.func @transform_14(%arg0: i32) -> (i32, i32) {
    %c0_i32 = arith.constant 0 : i32
    %c0_i32_0 = arith.constant 0 : i32
    %c0_i32_1 = arith.constant 0 : i32
    return %c0_i32, %c0_i32_0 : i32, i32
  }
  func.func @transform_15(%arg0: i32) -> (i32, i32, i32) {
    %c0_i32 = arith.constant 0 : i32
    %c0_i32_0 = arith.constant 0 : i32
    %c0_i32_1 = arith.constant 0 : i32
    return %arg0, %c0_i32, %c0_i32_0 : i32, i32, i32
  }
}

module attributes {stable_mosaic.version = 11 : i64} {
  func.func @encoder_layer_kernel(%arg0: i32, %arg1: memref<1x8x32xf32, #tpu.memory_space<vmem>>, %arg2: memref<1x1x8xf32, #tpu.memory_space<vmem>>, %arg3: memref<1x8x1xf32, #tpu.memory_space<vmem>>, %arg4: memref<32x384xbf16, #tpu.memory_space<vmem>>, %arg5: memref<1x384xf32, #tpu.memory_space<vmem>>, %arg6: memref<32x32xbf16, #tpu.memory_space<vmem>>, %arg7: memref<1x32xf32, #tpu.memory_space<vmem>>, %arg8: memref<1x32xf32, #tpu.memory_space<vmem>>, %arg9: memref<1x32xf32, #tpu.memory_space<vmem>>, %arg10: memref<32x64xbf16, #tpu.memory_space<vmem>>, %arg11: memref<1x64xf32, #tpu.memory_space<vmem>>, %arg12: memref<64x32xbf16, #tpu.memory_space<vmem>>, %arg13: memref<1x32xf32, #tpu.memory_space<vmem>>, %arg14: memref<1x32xf32, #tpu.memory_space<vmem>>, %arg15: memref<1x32xf32, #tpu.memory_space<vmem>>, %arg16: memref<1x8x32xf32, #tpu.memory_space<vmem>>) attributes {dimension_semantics = [#tpu.dimension_semantics<parallel>], iteration_bounds = array<i64: 2>, scalar_prefetch = 0 : i64, scratch_operands = 0 : i64, tpu.core_type = #tpu.core_type<tc>, window_params = [{transform_indices = @transform_0, window_bounds = array<i64: 1, 8, 32>}, {transform_indices = @transform_1, window_bounds = array<i64: 1, 1, 8>}, {transform_indices = @transform_2, window_bounds = array<i64: 1, 8, 1>}, {pipeline_mode = #tpu.pipeline_mode<synchronous>, transform_indices = @transform_3, window_bounds = array<i64: 32, 384>}, {pipeline_mode = #tpu.pipeline_mode<synchronous>, transform_indices = @transform_4, window_bounds = array<i64: 1, 384>}, {pipeline_mode = #tpu.pipeline_mode<synchronous>, transform_indices = @transform_5, window_bounds = array<i64: 32, 32>}, {pipeline_mode = #tpu.pipeline_mode<synchronous>, transform_indices = @transform_6, window_bounds = array<i64: 1, 32>}, {pipeline_mode = #tpu.pipeline_mode<synchronous>, transform_indices = @transform_7, window_bounds = array<i64: 1, 32>}, {pipeline_mode = #tpu.pipeline_mode<synchronous>, transform_indices = @transform_8, window_bounds = array<i64: 1, 32>}, {pipeline_mode = #tpu.pipeline_mode<synchronous>, transform_indices = @transform_9, window_bounds = array<i64: 32, 64>}, {pipeline_mode = #tpu.pipeline_mode<synchronous>, transform_indices = @transform_10, window_bounds = array<i64: 1, 64>}, {pipeline_mode = #tpu.pipeline_mode<synchronous>, transform_indices = @transform_11, window_bounds = array<i64: 64, 32>}, {pipeline_mode = #tpu.pipeline_mode<synchronous>, transform_indices = @transform_12, window_bounds = array<i64: 1, 32>}, {pipeline_mode = #tpu.pipeline_mode<synchronous>, transform_indices = @transform_13, window_bounds = array<i64: 1, 32>}, {pipeline_mode = #tpu.pipeline_mode<synchronous>, transform_indices = @transform_14, window_bounds = array<i64: 1, 32>}, {transform_indices = @transform_15, window_bounds = array<i64: 1, 8, 32>}]} {
    %c0 = arith.constant 0 : index
    %c0_0 = arith.constant 0 : index
    %c0_1 = arith.constant 0 : index
    %0 = vector.load %arg1[%c0, %c0_0, %c0_1] : memref<1x8x32xf32, #tpu.memory_space<vmem>>, vector<1x8x32xf32>
    %1 = vector.shape_cast %0 : vector<1x8x32xf32> to vector<8x32xf32>
    %c0_2 = arith.constant 0 : index
    %c0_3 = arith.constant 0 : index
    %c0_4 = arith.constant 0 : index
    %2 = vector.load %arg3[%c0_2, %c0_3, %c0_4] : memref<1x8x1xf32, #tpu.memory_space<vmem>>, vector<1x8x1xf32>
    %3 = vector.shape_cast %2 : vector<1x8x1xf32> to vector<8x1xf32>
    %c0_5 = arith.constant 0 : index
    %c0_6 = arith.constant 0 : index
    %c0_7 = arith.constant 0 : index
    %4 = vector.load %arg2[%c0_5, %c0_6, %c0_7] : memref<1x1x8xf32, #tpu.memory_space<vmem>>, vector<1x1x8xf32>
    %5 = vector.shape_cast %4 : vector<1x1x8xf32> to vector<1x1x1x8xf32>
    %cst = arith.constant -1.000000e+30 : f32
    %6 = vector.broadcast %cst : f32 to vector<1x1x1x8xf32>
    %7 = arith.mulf %5, %6 : vector<1x1x1x8xf32>
    %8 = arith.truncf %1 : vector<8x32xf32> to vector<8x32xbf16>
    %c0_8 = arith.constant 0 : index
    %c0_9 = arith.constant 0 : index
    %9 = vector.load %arg4[%c0_8, %c0_9] : memref<32x384xbf16, #tpu.memory_space<vmem>>, vector<32x384xbf16>
    %cst_10 = arith.constant dense<0.000000e+00> : vector<8x384xf32>
    %10 = tpu.matmul %8, %9, %cst_10 {dimension_numbers = #tpu.dot_dimension_numbers<[1], [0], [0], [1], [0, 0, 1, 1], [], []>} : vector<8x32xbf16>, vector<32x384xbf16>, vector<8x384xf32> -> vector<8x384xf32>
    %c0_11 = arith.constant 0 : index
    %c0_12 = arith.constant 0 : index
    %11 = vector.load %arg5[%c0_11, %c0_12] : memref<1x384xf32, #tpu.memory_space<vmem>>, vector<1x384xf32>
    %12 = vector.broadcast %11 : vector<1x384xf32> to vector<8x384xf32>
    %13 = arith.addf %10, %12 : vector<8x384xf32>
    %14 = vector.extract_strided_slice %13 {offsets = [0, 0], sizes = [8, 32], strides = [1, 1]} : vector<8x384xf32> to vector<8x32xf32>
    %15 = vector.shape_cast %14 : vector<8x32xf32> to vector<1x8x32xf32>
    %16 = vector.extract_strided_slice %13 {offsets = [0, 128], sizes = [8, 32], strides = [1, 1]} : vector<8x384xf32> to vector<8x32xf32>
    %17 = vector.shape_cast %16 : vector<8x32xf32> to vector<1x8x32xf32>
    %18 = vector.extract_strided_slice %13 {offsets = [0, 256], sizes = [8, 32], strides = [1, 1]} : vector<8x384xf32> to vector<8x32xf32>
    %19 = vector.shape_cast %18 : vector<8x32xf32> to vector<1x8x32xf32>
    %20 = vector.extract_strided_slice %15 {offsets = [0, 0, 0], sizes = [1, 8, 8], strides = [1, 1, 1]} : vector<1x8x32xf32> to vector<1x8x8xf32>
    %21 = vector.extract_strided_slice %15 {offsets = [0, 0, 8], sizes = [1, 8, 8], strides = [1, 1, 1]} : vector<1x8x32xf32> to vector<1x8x8xf32>
    %22 = vector.extract_strided_slice %15 {offsets = [0, 0, 16], sizes = [1, 8, 8], strides = [1, 1, 1]} : vector<1x8x32xf32> to vector<1x8x8xf32>
    %23 = vector.extract_strided_slice %15 {offsets = [0, 0, 24], sizes = [1, 8, 8], strides = [1, 1, 1]} : vector<1x8x32xf32> to vector<1x8x8xf32>
    %24 = vector.shape_cast %20 : vector<1x8x8xf32> to vector<1x1x8x8xf32>
    %25 = vector.shape_cast %21 : vector<1x8x8xf32> to vector<1x1x8x8xf32>
    %26 = vector.shape_cast %22 : vector<1x8x8xf32> to vector<1x1x8x8xf32>
    %27 = vector.shape_cast %23 : vector<1x8x8xf32> to vector<1x1x8x8xf32>
    %28 = tpu.concatenate %24, %25, %26, %27 in 0 : vector<1x1x8x8xf32>, vector<1x1x8x8xf32>, vector<1x1x8x8xf32>, vector<1x1x8x8xf32> -> vector<4x1x8x8xf32>
    %29 = vector.shape_cast %28 : vector<4x1x8x8xf32> to vector<4x8x8xf32>
    %30 = arith.truncf %29 : vector<4x8x8xf32> to vector<4x8x8xbf16>
    %31 = vector.extract_strided_slice %17 {offsets = [0, 0, 0], sizes = [1, 8, 8], strides = [1, 1, 1]} : vector<1x8x32xf32> to vector<1x8x8xf32>
    %32 = vector.extract_strided_slice %17 {offsets = [0, 0, 8], sizes = [1, 8, 8], strides = [1, 1, 1]} : vector<1x8x32xf32> to vector<1x8x8xf32>
    %33 = vector.extract_strided_slice %17 {offsets = [0, 0, 16], sizes = [1, 8, 8], strides = [1, 1, 1]} : vector<1x8x32xf32> to vector<1x8x8xf32>
    %34 = vector.extract_strided_slice %17 {offsets = [0, 0, 24], sizes = [1, 8, 8], strides = [1, 1, 1]} : vector<1x8x32xf32> to vector<1x8x8xf32>
    %35 = vector.shape_cast %31 : vector<1x8x8xf32> to vector<1x1x8x8xf32>
    %36 = vector.shape_cast %32 : vector<1x8x8xf32> to vector<1x1x8x8xf32>
    %37 = vector.shape_cast %33 : vector<1x8x8xf32> to vector<1x1x8x8xf32>
    %38 = vector.shape_cast %34 : vector<1x8x8xf32> to vector<1x1x8x8xf32>
    %39 = tpu.concatenate %35, %36, %37, %38 in 0 : vector<1x1x8x8xf32>, vector<1x1x8x8xf32>, vector<1x1x8x8xf32>, vector<1x1x8x8xf32> -> vector<4x1x8x8xf32>
    %40 = vector.shape_cast %39 : vector<4x1x8x8xf32> to vector<4x8x8xf32>
    %41 = arith.truncf %40 : vector<4x8x8xf32> to vector<4x8x8xbf16>
    %42 = vector.extract_strided_slice %19 {offsets = [0, 0, 0], sizes = [1, 8, 8], strides = [1, 1, 1]} : vector<1x8x32xf32> to vector<1x8x8xf32>
    %43 = vector.extract_strided_slice %19 {offsets = [0, 0, 8], sizes = [1, 8, 8], strides = [1, 1, 1]} : vector<1x8x32xf32> to vector<1x8x8xf32>
    %44 = vector.extract_strided_slice %19 {offsets = [0, 0, 16], sizes = [1, 8, 8], strides = [1, 1, 1]} : vector<1x8x32xf32> to vector<1x8x8xf32>
    %45 = vector.extract_strided_slice %19 {offsets = [0, 0, 24], sizes = [1, 8, 8], strides = [1, 1, 1]} : vector<1x8x32xf32> to vector<1x8x8xf32>
    %46 = vector.shape_cast %42 : vector<1x8x8xf32> to vector<1x1x8x8xf32>
    %47 = vector.shape_cast %43 : vector<1x8x8xf32> to vector<1x1x8x8xf32>
    %48 = vector.shape_cast %44 : vector<1x8x8xf32> to vector<1x1x8x8xf32>
    %49 = vector.shape_cast %45 : vector<1x8x8xf32> to vector<1x1x8x8xf32>
    %50 = tpu.concatenate %46, %47, %48, %49 in 0 : vector<1x1x8x8xf32>, vector<1x1x8x8xf32>, vector<1x1x8x8xf32>, vector<1x1x8x8xf32> -> vector<4x1x8x8xf32>
    %51 = vector.shape_cast %50 : vector<4x1x8x8xf32> to vector<4x8x8xf32>
    %52 = arith.truncf %51 : vector<4x8x8xf32> to vector<4x8x8xbf16>
    "tpu.trace_start"() <{level = 10 : i32, message = "bqd,bkd->bqk"}> : () -> ()
    %cst_13 = arith.constant dense<0.000000e+00> : vector<4x8x8xf32>
    %53 = tpu.matmul %30, %41, %cst_13 {dimension_numbers = #tpu.dot_dimension_numbers<[2], [2], [1], [1], [0, 0, 0, 1, 1, 1], [0], [0]>} : vector<4x8x8xbf16>, vector<4x8x8xbf16>, vector<4x8x8xf32> -> vector<4x8x8xf32>
    "tpu.trace_stop"() : () -> ()
    %54 = vector.shape_cast %53 : vector<4x8x8xf32> to vector<4x1x8x8xf32>
    %55 = vector.broadcast %7 : vector<1x1x1x8xf32> to vector<4x1x8x8xf32>
    %56 = arith.addf %54, %55 : vector<4x1x8x8xf32>
    %cst_14 = arith.constant dense<0xFF800000> : vector<4x1x8xf32>
    %57 = vector.multi_reduction <maximumf>, %56, %cst_14 [3] : vector<4x1x8x8xf32> to vector<4x1x8xf32>
    %58 = vector.shape_cast %57 : vector<4x1x8xf32> to vector<4x1x8x1xf32>
    %59 = vector.broadcast %58 : vector<4x1x8x1xf32> to vector<4x1x8x8xf32>
    %60 = arith.subf %56, %59 : vector<4x1x8x8xf32>
    %61 = math.exp %60 : vector<4x1x8x8xf32>
    %cst_15 = arith.constant dense<0.000000e+00> : vector<4x1x8xf32>
    %62 = vector.multi_reduction <add>, %61, %cst_15 [3] : vector<4x1x8x8xf32> to vector<4x1x8xf32>
    %63 = vector.shape_cast %62 : vector<4x1x8xf32> to vector<4x1x8x1xf32>
    %64 = tpu.reciprocal %63 {approx = true} : vector<4x1x8x1xf32> -> vector<4x1x8x1xf32>
    %65 = vector.broadcast %64 : vector<4x1x8x1xf32> to vector<4x1x8x8xf32>
    %66 = arith.mulf %61, %65 : vector<4x1x8x8xf32>
    %67 = vector.shape_cast %66 : vector<4x1x8x8xf32> to vector<4x8x8xf32>
    %68 = arith.truncf %67 : vector<4x8x8xf32> to vector<4x8x8xbf16>
    "tpu.trace_start"() <{level = 10 : i32, message = "bqk,bkd->bqd"}> : () -> ()
    %cst_16 = arith.constant dense<0.000000e+00> : vector<4x8x8xf32>
    %69 = tpu.matmul %68, %52, %cst_16 {dimension_numbers = #tpu.dot_dimension_numbers<[2], [1], [1], [2], [0, 0, 0, 1, 1, 2], [0], [0]>} : vector<4x8x8xbf16>, vector<4x8x8xbf16>, vector<4x8x8xf32> -> vector<4x8x8xf32>
    "tpu.trace_stop"() : () -> ()
    %70 = vector.shape_cast %69 : vector<4x8x8xf32> to vector<4x1x8x8xf32>
    %71 = vector.extract_strided_slice %70 {offsets = [0, 0, 0, 0], sizes = [1, 1, 8, 8], strides = [1, 1, 1, 1]} : vector<4x1x8x8xf32> to vector<1x1x8x8xf32>
    %72 = vector.shape_cast %71 : vector<1x1x8x8xf32> to vector<1x8x8xf32>
    %73 = vector.extract_strided_slice %70 {offsets = [1, 0, 0, 0], sizes = [1, 1, 8, 8], strides = [1, 1, 1, 1]} : vector<4x1x8x8xf32> to vector<1x1x8x8xf32>
    %74 = vector.shape_cast %73 : vector<1x1x8x8xf32> to vector<1x8x8xf32>
    %75 = vector.extract_strided_slice %70 {offsets = [2, 0, 0, 0], sizes = [1, 1, 8, 8], strides = [1, 1, 1, 1]} : vector<4x1x8x8xf32> to vector<1x1x8x8xf32>
    %76 = vector.shape_cast %75 : vector<1x1x8x8xf32> to vector<1x8x8xf32>
    %77 = vector.extract_strided_slice %70 {offsets = [3, 0, 0, 0], sizes = [1, 1, 8, 8], strides = [1, 1, 1, 1]} : vector<4x1x8x8xf32> to vector<1x1x8x8xf32>
    %78 = vector.shape_cast %77 : vector<1x1x8x8xf32> to vector<1x8x8xf32>
    %79 = tpu.concatenate %72, %74, %76, %78 in 2 : vector<1x8x8xf32>, vector<1x8x8xf32>, vector<1x8x8xf32>, vector<1x8x8xf32> -> vector<1x8x32xf32>
    %80 = vector.shape_cast %79 : vector<1x8x32xf32> to vector<8x32xf32>
    %81 = arith.truncf %80 : vector<8x32xf32> to vector<8x32xbf16>
    %c0_17 = arith.constant 0 : index
    %c0_18 = arith.constant 0 : index
    %82 = vector.load %arg6[%c0_17, %c0_18] : memref<32x32xbf16, #tpu.memory_space<vmem>>, vector<32x32xbf16>
    %cst_19 = arith.constant dense<0.000000e+00> : vector<8x32xf32>
    %83 = tpu.matmul %81, %82, %cst_19 {dimension_numbers = #tpu.dot_dimension_numbers<[1], [0], [0], [1], [0, 0, 1, 1], [], []>} : vector<8x32xbf16>, vector<32x32xbf16>, vector<8x32xf32> -> vector<8x32xf32>
    %c0_20 = arith.constant 0 : index
    %c0_21 = arith.constant 0 : index
    %84 = vector.load %arg7[%c0_20, %c0_21] : memref<1x32xf32, #tpu.memory_space<vmem>>, vector<1x32xf32>
    %85 = vector.broadcast %84 : vector<1x32xf32> to vector<8x32xf32>
    %86 = arith.addf %83, %85 : vector<8x32xf32>
    %87 = arith.addf %86, %1 : vector<8x32xf32>
    %c0_22 = arith.constant 0 : index
    %c0_23 = arith.constant 0 : index
    %88 = vector.load %arg8[%c0_22, %c0_23] : memref<1x32xf32, #tpu.memory_space<vmem>>, vector<1x32xf32>
    %c0_24 = arith.constant 0 : index
    %c0_25 = arith.constant 0 : index
    %89 = vector.load %arg9[%c0_24, %c0_25] : memref<1x32xf32, #tpu.memory_space<vmem>>, vector<1x32xf32>
    %cst_26 = arith.constant dense<0.000000e+00> : vector<8xf32>
    %90 = vector.multi_reduction <add>, %87, %cst_26 [1] : vector<8x32xf32> to vector<8xf32>
    %91 = vector.shape_cast %90 : vector<8xf32> to vector<8x1xf32>
    %cst_27 = arith.constant 3.200000e+01 : f32
    %92 = vector.broadcast %cst_27 : f32 to vector<8x1xf32>
    %93 = arith.divf %91, %92 : vector<8x1xf32>
    %94 = vector.broadcast %93 : vector<8x1xf32> to vector<8x32xf32>
    %95 = arith.subf %87, %94 : vector<8x32xf32>
    %96 = arith.mulf %95, %95 : vector<8x32xf32>
    %cst_28 = arith.constant dense<0.000000e+00> : vector<8xf32>
    %97 = vector.multi_reduction <add>, %96, %cst_28 [1] : vector<8x32xf32> to vector<8xf32>
    %98 = vector.shape_cast %97 : vector<8xf32> to vector<8x1xf32>
    %cst_29 = arith.constant 3.200000e+01 : f32
    %99 = vector.broadcast %cst_29 : f32 to vector<8x1xf32>
    %100 = arith.divf %98, %99 : vector<8x1xf32>
    %101 = vector.broadcast %93 : vector<8x1xf32> to vector<8x32xf32>
    %102 = arith.subf %87, %101 : vector<8x32xf32>
    %cst_30 = arith.constant 9.99999974E-6 : f32
    %103 = vector.broadcast %cst_30 : f32 to vector<8x1xf32>
    %104 = arith.addf %100, %103 : vector<8x1xf32>
    %105 = math.rsqrt %104 : vector<8x1xf32>
    %106 = vector.broadcast %105 : vector<8x1xf32> to vector<8x32xf32>
    %107 = arith.mulf %102, %106 : vector<8x32xf32>
    %108 = vector.broadcast %88 : vector<1x32xf32> to vector<8x32xf32>
    %109 = arith.mulf %107, %108 : vector<8x32xf32>
    %110 = vector.broadcast %89 : vector<1x32xf32> to vector<8x32xf32>
    %111 = arith.addf %109, %110 : vector<8x32xf32>
    %112 = vector.broadcast %3 : vector<8x1xf32> to vector<8x32xf32>
    %113 = arith.mulf %111, %112 : vector<8x32xf32>
    %114 = arith.truncf %113 : vector<8x32xf32> to vector<8x32xbf16>
    %cst_31 = arith.constant 0.000000e+00 : f32
    %115 = vector.broadcast %cst_31 : f32 to vector<8x32xf32>
    %c0_32 = arith.constant 0 : index
    %c0_33 = arith.constant 0 : index
    %116 = vector.load %arg10[%c0_32, %c0_33] : memref<32x64xbf16, #tpu.memory_space<vmem>>, vector<32x64xbf16>
    %cst_34 = arith.constant dense<0.000000e+00> : vector<8x64xf32>
    %117 = tpu.matmul %114, %116, %cst_34 {dimension_numbers = #tpu.dot_dimension_numbers<[1], [0], [0], [1], [0, 0, 1, 1], [], []>} : vector<8x32xbf16>, vector<32x64xbf16>, vector<8x64xf32> -> vector<8x64xf32>
    %c0_35 = arith.constant 0 : index
    %c0_36 = arith.constant 0 : index
    %118 = vector.load %arg11[%c0_35, %c0_36] : memref<1x64xf32, #tpu.memory_space<vmem>>, vector<1x64xf32>
    %119 = vector.broadcast %118 : vector<1x64xf32> to vector<8x64xf32>
    %120 = arith.addf %117, %119 : vector<8x64xf32>
    %cst_37 = arith.constant 0.000000e+00 : f32
    %121 = vector.broadcast %cst_37 : f32 to vector<8x64xf32>
    %122 = arith.maximumf %120, %121 : vector<8x64xf32>
    %123 = arith.truncf %122 : vector<8x64xf32> to vector<8x64xbf16>
    %c0_38 = arith.constant 0 : index
    %c0_39 = arith.constant 0 : index
    %124 = vector.load %arg12[%c0_38, %c0_39] : memref<64x32xbf16, #tpu.memory_space<vmem>>, vector<64x32xbf16>
    %cst_40 = arith.constant dense<0.000000e+00> : vector<8x32xf32>
    %125 = tpu.matmul %123, %124, %cst_40 {dimension_numbers = #tpu.dot_dimension_numbers<[1], [0], [0], [1], [0, 0, 1, 1], [], []>} : vector<8x64xbf16>, vector<64x32xbf16>, vector<8x32xf32> -> vector<8x32xf32>
    %126 = arith.addf %115, %125 : vector<8x32xf32>
    %c0_41 = arith.constant 0 : index
    %c0_42 = arith.constant 0 : index
    %127 = vector.load %arg13[%c0_41, %c0_42] : memref<1x32xf32, #tpu.memory_space<vmem>>, vector<1x32xf32>
    %128 = vector.broadcast %127 : vector<1x32xf32> to vector<8x32xf32>
    %129 = arith.addf %126, %128 : vector<8x32xf32>
    %130 = arith.addf %129, %113 : vector<8x32xf32>
    %c0_43 = arith.constant 0 : index
    %c0_44 = arith.constant 0 : index
    %131 = vector.load %arg14[%c0_43, %c0_44] : memref<1x32xf32, #tpu.memory_space<vmem>>, vector<1x32xf32>
    %c0_45 = arith.constant 0 : index
    %c0_46 = arith.constant 0 : index
    %132 = vector.load %arg15[%c0_45, %c0_46] : memref<1x32xf32, #tpu.memory_space<vmem>>, vector<1x32xf32>
    %cst_47 = arith.constant dense<0.000000e+00> : vector<8xf32>
    %133 = vector.multi_reduction <add>, %130, %cst_47 [1] : vector<8x32xf32> to vector<8xf32>
    %134 = vector.shape_cast %133 : vector<8xf32> to vector<8x1xf32>
    %cst_48 = arith.constant 3.200000e+01 : f32
    %135 = vector.broadcast %cst_48 : f32 to vector<8x1xf32>
    %136 = arith.divf %134, %135 : vector<8x1xf32>
    %137 = vector.broadcast %136 : vector<8x1xf32> to vector<8x32xf32>
    %138 = arith.subf %130, %137 : vector<8x32xf32>
    %139 = arith.mulf %138, %138 : vector<8x32xf32>
    %cst_49 = arith.constant dense<0.000000e+00> : vector<8xf32>
    %140 = vector.multi_reduction <add>, %139, %cst_49 [1] : vector<8x32xf32> to vector<8xf32>
    %141 = vector.shape_cast %140 : vector<8xf32> to vector<8x1xf32>
    %cst_50 = arith.constant 3.200000e+01 : f32
    %142 = vector.broadcast %cst_50 : f32 to vector<8x1xf32>
    %143 = arith.divf %141, %142 : vector<8x1xf32>
    %144 = vector.broadcast %136 : vector<8x1xf32> to vector<8x32xf32>
    %145 = arith.subf %130, %144 : vector<8x32xf32>
    %cst_51 = arith.constant 9.99999974E-6 : f32
    %146 = vector.broadcast %cst_51 : f32 to vector<8x1xf32>
    %147 = arith.addf %143, %146 : vector<8x1xf32>
    %148 = math.rsqrt %147 : vector<8x1xf32>
    %149 = vector.broadcast %148 : vector<8x1xf32> to vector<8x32xf32>
    %150 = arith.mulf %145, %149 : vector<8x32xf32>
    %151 = vector.broadcast %131 : vector<1x32xf32> to vector<8x32xf32>
    %152 = arith.mulf %150, %151 : vector<8x32xf32>
    %153 = vector.broadcast %132 : vector<1x32xf32> to vector<8x32xf32>
    %154 = arith.addf %152, %153 : vector<8x32xf32>
    %155 = vector.broadcast %3 : vector<8x1xf32> to vector<8x32xf32>
    %156 = arith.mulf %154, %155 : vector<8x32xf32>
    %157 = vector.shape_cast %156 : vector<8x32xf32> to vector<1x8x32xf32>
    %c0_52 = arith.constant 0 : index
    %c0_53 = arith.constant 0 : index
    %c0_54 = arith.constant 0 : index
    %158 = vector.load %arg16[%c0_52, %c0_53, %c0_54] : memref<1x8x32xf32, #tpu.memory_space<vmem>>, vector<1x8x32xf32>
    tpu.vector_store %arg16[%c0_52, %c0_53, %c0_54], %157 {strides = array<i32>} : memref<1x8x32xf32, #tpu.memory_space<vmem>>, vector<1x8x32xf32>,
    return
  }
  func.func @transform_0(%arg0: i32) -> (i32, i32, i32) {
    %c0_i32 = arith.constant 0 : i32
    %c0_i32_0 = arith.constant 0 : i32
    %c0_i32_1 = arith.constant 0 : i32
    return %arg0, %c0_i32, %c0_i32_0 : i32, i32, i32
  }
  func.func @transform_1(%arg0: i32) -> (i32, i32, i32) {
    %c0_i32 = arith.constant 0 : i32
    %c0_i32_0 = arith.constant 0 : i32
    %c0_i32_1 = arith.constant 0 : i32
    return %arg0, %c0_i32, %c0_i32_0 : i32, i32, i32
  }
  func.func @transform_2(%arg0: i32) -> (i32, i32, i32) {
    %c0_i32 = arith.constant 0 : i32
    %c0_i32_0 = arith.constant 0 : i32
    %c0_i32_1 = arith.constant 0 : i32
    return %arg0, %c0_i32, %c0_i32_0 : i32, i32, i32
  }
  func.func @transform_3(%arg0: i32) -> (i32, i32) {
    %c0_i32 = arith.constant 0 : i32
    %c0_i32_0 = arith.constant 0 : i32
    %c0_i32_1 = arith.constant 0 : i32
    return %c0_i32, %c0_i32_0 : i32, i32
  }
  func.func @transform_4(%arg0: i32) -> (i32, i32) {
    %c0_i32 = arith.constant 0 : i32
    %c0_i32_0 = arith.constant 0 : i32
    %c0_i32_1 = arith.constant 0 : i32
    return %c0_i32, %c0_i32_0 : i32, i32
  }
  func.func @transform_5(%arg0: i32) -> (i32, i32) {
    %c0_i32 = arith.constant 0 : i32
    %c0_i32_0 = arith.constant 0 : i32
    %c0_i32_1 = arith.constant 0 : i32
    return %c0_i32, %c0_i32_0 : i32, i32
  }
  func.func @transform_6(%arg0: i32) -> (i32, i32) {
    %c0_i32 = arith.constant 0 : i32
    %c0_i32_0 = arith.constant 0 : i32
    %c0_i32_1 = arith.constant 0 : i32
    return %c0_i32, %c0_i32_0 : i32, i32
  }
  func.func @transform_7(%arg0: i32) -> (i32, i32) {
    %c0_i32 = arith.constant 0 : i32
    %c0_i32_0 = arith.constant 0 : i32
    %c0_i32_1 = arith.constant 0 : i32
    return %c0_i32, %c0_i32_0 : i32, i32
  }
  func.func @transform_8(%arg0: i32) -> (i32, i32) {
    %c0_i32 = arith.constant 0 : i32
    %c0_i32_0 = arith.constant 0 : i32
    %c0_i32_1 = arith.constant 0 : i32
    return %c0_i32, %c0_i32_0 : i32, i32
  }
  func.func @transform_9(%arg0: i32) -> (i32, i32) {
    %c0_i32 = arith.constant 0 : i32
    %c0_i32_0 = arith.constant 0 : i32
    %c0_i32_1 = arith.constant 0 : i32
    return %c0_i32, %c0_i32_0 : i32, i32
  }
  func.func @transform_10(%arg0: i32) -> (i32, i32) {
    %c0_i32 = arith.constant 0 : i32
    %c0_i32_0 = arith.constant 0 : i32
    %c0_i32_1 = arith.constant 0 : i32
    return %c0_i32, %c0_i32_0 : i32, i32
  }
  func.func @transform_11(%arg0: i32) -> (i32, i32) {
    %c0_i32 = arith.constant 0 : i32
    %c0_i32_0 = arith.constant 0 : i32
    %c0_i32_1 = arith.constant 0 : i32
    return %c0_i32, %c0_i32_0 : i32, i32
  }
  func.func @transform_12(%arg0: i32) -> (i32, i32) {
    %c0_i32 = arith.constant 0 : i32
    %c0_i32_0 = arith.constant 0 : i32
    %c0_i32_1 = arith.constant 0 : i32
    return %c0_i32, %c0_i32_0 : i32, i32
  }
  func.func @transform_13(%arg0: i32) -> (i32, i32) {
    %c0_i32 = arith.constant 0 : i32
    %c0_i32_0 = arith.constant 0 : i32
    %c0_i32_1 = arith.constant 0 : i32
    return %c0_i32, %c0_i32_0 : i32, i32
  }
  func.func @transform_14(%arg0: i32) -> (i32, i32) {
    %c0_i32 = arith.constant 0 : i32
    %c0_i32_0 = arith.constant 0 : i32
    %c0_i32_1 = arith.constant 0 : i32
    return %c0_i32, %c0_i32_0 : i32, i32
  }
  func.func @transform_15(%arg0: i32) -> (i32, i32, i32) {
    %c0_i32 = arith.constant 0 : i32
    %c0_i32_0 = arith.constant 0 : i32
    %c0_i32_1 = arith.constant 0 : i32
    return %arg0, %c0_i32, %c0_i32_0 : i32, i32, i32
  }
}

</mosaic_0001>

<bundles_post_ra>
// kernel: tpu_custom_call.1
= control target key start
LH: loop header
LB: loop body
LE: loop exit
PB: predicated region body
PF: predicated region fallthrough
CT: control target
= control target key end

     0   :  { %s2704_s0 = inlined_call_operand.vmem [shape: f32[2,8,32], index: 0, kind: input, shape index: {}]   ;;  %s2705_s1 = inlined_call_operand.hbm [shape: f32[2,1,8], index: 1, kind: input, shape index: {}]   ;;  %s2706_s2 = inlined_call_operand.vmem [shape: f32[2,8,1], index: 2, kind: input, shape index: {}]   ;;  %s2707_s3 = inlined_call_operand.vmem [shape: bf16[32,384], index: 3, kind: input, shape index: {}]   ;;  %s2708_s4 = inlined_call_operand.hbm [shape: f32[1,384], index: 4, kind: input, shape index: {}]   ;;  %s2709_s5 = inlined_call_operand.hbm [shape: bf16[32,32], index: 5, kind: input, shape index: {}]   ;;  %s2710_s6 = inlined_call_operand.hbm [shape: f32[1,32], index: 6, kind: input, shape index: {}]   ;;  %s2711_s7 = inlined_call_operand.hbm [shape: f32[1,32], index: 7, kind: input, shape index: {}]   ;;  %s2712_s8 = inlined_call_operand.hbm [shape: f32[1,32], index: 8, kind: input, shape index: {}]   ;;  %s2713_s9 = inlined_call_operand.vmem [shape: bf16[32,64], index: 9, kind: input, shape index: {}]   ;;  %s2714_s10 = inlined_call_operand.vmem [shape: f32[1,64], index: 10, kind: input, shape index: {}]   ;;  %s2715_s11 = inlined_call_operand.vmem [shape: bf16[64,32], index: 11, kind: input, shape index: {}]   ;;  %s2716_s12 = inlined_call_operand.vmem [shape: f32[1,32], index: 12, kind: input, shape index: {}]   ;;  %s2717_s13 = inlined_call_operand.vmem [shape: f32[1,32], index: 13, kind: input, shape index: {}]   ;;  %s2718_s14 = inlined_call_operand.vmem [shape: f32[1,32], index: 14, kind: input, shape index: {}]   ;;  %s2719_s15 = inlined_call_operand.hbm [shape: f32[2,8,32], index: 15, kind: output, shape index: {}]  }
   0x1   :  { %2728 = sst [smem:[#allocation22_spill]] %s2708_s4 }
   0x2   :  { %2729 = sst [smem:[#allocation23_spill]] %s2709_s5 }
   0x3   :  { %2730 = sst [smem:[#allocation24_spill]] %s2710_s6 }
   0x4   :  { %2731 = sst [smem:[#allocation25_spill]] %s2711_s7 }
   0x5   :  { %2732 = sst [smem:[#allocation26_spill]] %s2712_s8 }
   0x6   :  { %2733 = sst [smem:[#allocation27_spill]] %s2718_s14 }
   0x7   :  { %2734 = sst [smem:[#allocation28_spill]] %s2719_s15 }
   0x8   :  { %20 = vsyncpa [#allocation3], 0 }
   0x9   :  { %22 = vsyncpa [#allocation3 + $0x1], 0 }
   0xa   :  { %23 = vsyncpa [#allocation6], 0 }
   0xb   :  { %24 = vsyncpa [#allocation9], 0 }
   0xc   :  { %25 = vsyncpa [#allocation12], 0 }
   0xd   :  { %26 = vsyncpa [#allocation4], 0 }
   0xe   :  { %28 = vsyncpa [#allocation4 + $0x1], 0  ;;  %s2331_s18 = smov 0   ;;  %s2333_s19 = smov 0  }
   0xf   :  { %s2335_s20 = smov 0   ;;  %s2337_s21 = smov 0  }
  0x10 LB: > { %2735 = sst [smem:[#allocation19_spill]] %s2227_s20  ;;  %s2233_s22 = smov [#allocation5]   ;;  %s2231_s21 = sphi %s2337_s21, %s2764_s21   ;;  %s2227_s20 = sphi %s2335_s20, %s2766_s20   ;;  %s2223_s19 = sphi %s2333_s19, %s2768_s19   ;;  %s2219_s18 = sphi %s2331_s18, %s2767_s18  }
  0x11   : > { %s411_s23 = sshll.u32 %s2233_s22, 4  ;;  %s2352_s24 = sadd.s32 4294967295, %s2231_s21   ;;  %s412_s23 = int_to_ptr.vmem [resolvable:$true] %s411_s23 }
  0x12   : > { %p1683_p0 = scmp.ge.s32.totalorder %s2231_s21, 1  ;;  %p2721_p1 = scmp.eq.s32.totalorder %s2352_s24, 0 }
  0x13   : > { %p395_p2 = scmp.lt.s32.totalorder %s2231_s21, 3  ;;  %s2234_s26 = smov [#allocation8]  }
  0x14   : > { %s435_s27 = sshll.u32 %s2234_s26, 4  ;;  %s2235_s28 = smov [#allocation7]   ;;  %s436_s27 = int_to_ptr.vmem [resolvable:$true] %s435_s27 }
  0x15   : > { %p2357_p3 = pnand %p1683_p0, %p395_p2  ;;  %s421_s29 = sshll.u32 %s2235_s28, 4  ;;  %s2370_s29 = int_to_ptr.vmem [resolvable:$true] %s421_s29 }
  0x16   : > { %s2008_s17 = scalar_lea.vmem %s412_s23, 48  ;;  %s2015_s22 = scalar_lea.vmem %s412_s23, 64 }
  0x17   : > { %s2736_s25 = scalar_select %p2357_p3, 1, 0 }
  0x18   : > { %p1876_p5 = pneg %p2357_p3  ;;  %p2009_p8 = scmp.ne.s32.totalorder %s412_s23, %s2008_s17 }
  0x19   : > { %p2016_p11 = scmp.lt.s32.totalorder %s412_s23, %s412_s23  ;;  %p2017_p12 = scmp.lt.s32.totalorder %s2015_s22, %s2008_s17 }
  0x1a   : > { %p2366_p6 = pnand %p1876_p5, %p2721_p1 }
  0x1b   : > { %p2018_p13 = por %p2017_p12, %p2016_p11 }
  0x1c   : > { %p2374_p7 = pneg %p2366_p6 }
  0x1e   : > { %p2011_p9 = pnand %p2009_p8, %p2374_p7 }
  0x20   : > { %p2012_p10 = pneg %p2011_p9 }
  0x22   : > { %p2019_p0 = pnand %p2018_p13, %p2012_p10 }
  0x24   : > { %2022 = shalt.err (!%p2019_p0)
}
  0x25   : > { %s2739_s4 = sld [smem:[#allocation22_spill]]  ;;  %s2034_s15 = scalar_lea.vmem %s436_s27, 16 }
  0x26   : > { %p2035_p2 = scmp.ne.s32.totalorder %s436_s27, %s2034_s15  ;;  %s2041_s14 = scalar_lea.vmem %s436_s27, 32 }
  0x27   : > { %p2042_p8 = scmp.lt.s32.totalorder %s436_s27, %s436_s27  ;;  %p2043_p9 = scmp.lt.s32.totalorder %s2041_s14, %s2034_s15 }
  0x28   : > { %p2037_p5 = pnand %p2035_p2, %p2374_p7 }
  0x29   : > { %p2044_p1 = por %p2043_p9, %p2042_p8 }
  0x2a   : > { %p2038_p4 = pneg %p2037_p5 }
  0x2b   : > { %1879 = dma.hbm_to_vmem [thread:$0]  (!%p2366_p6), %s2739_s4, 48, %s412_s23, [#allocation6]  }
  0x2c   : > { %p2045_p3 = pnand %p2044_p1, %p2038_p4 }
  0x2e   : > { %2048 = shalt.err (!%p2045_p3)
}
  0x2f   : > { %s2740_s6 = sld [smem:[#allocation24_spill]]  ;;  %s2060_s23 = scalar_lea.vmem %s2370_s29, 256 }
  0x30   : > { %p2061_p10 = scmp.ne.s32.totalorder %s2370_s29, %s2060_s23  ;;  %p2068_p13 = scmp.lt.s32.totalorder %s2370_s29, %s2370_s29 }
  0x31   : > { %p2069_p0 = scmp.lt.s32.totalorder %s2060_s23, %s2060_s23 }
  0x32   : > { %p2063_p11 = pnand %p2061_p10, %p2374_p7 }
  0x33   : > { %p2070_p1 = por %p2069_p0, %p2068_p13 }
  0x34   : > { %p2064_p12 = pneg %p2063_p11 }
  0x35   : > { %1885 = dma.hbm_to_vmem [thread:$0]  (!%p2366_p6), %s2740_s6, 16, %s436_s27, [#allocation9]  }
  0x36   : > { %p2071_p3 = pnand %p2070_p1, %p2064_p12 }
  0x38   : > { %2074 = shalt.err (!%p2071_p3)
}
  0x39   : > { %s2236_s14 = smov 64   ;;  %s2237_s15 = smov 4  }
  0x3a   : > { %s2741_s5 = sld [smem:[#allocation23_spill]]  ;;  %s2238_s27 = smov [#allocation10]  }
  0x3b   : > { %s446_s17 = sshll.u32 %s2238_s27, 4  ;;  %s2239_s22 = smov [#allocation11]   ;;  %s447_s17 = int_to_ptr.vmem [resolvable:$true] %s446_s17 }
  0x3c   : > { %s457_s4 = sshll.u32 %s2239_s22, 4  ;;  %s2086_s6 = scalar_lea.vmem %s447_s17, 16  ;;  %s458_s4 = int_to_ptr.vmem [resolvable:$true] %s457_s4 }
  0x3d   : > { %p2087_p4 = scmp.ne.s32.totalorder %s447_s17, %s2086_s6  ;;  %s2093_s23 = scalar_lea.vmem %s447_s17, 32 }
  0x3e   : > { %p2094_p8 = scmp.lt.s32.totalorder %s447_s17, %s447_s17  ;;  %p2095_p9 = scmp.lt.s32.totalorder %s2093_s23, %s2086_s6 }
  0x3f   : > { %p2089_p2 = pnand %p2087_p4, %p2374_p7 }
  0x40   : > { %1882 = dma.hbm_to_vmem [thread:$0]  (!%p2366_p6), %s2741_s5, 256, %s2370_s29, [#allocation6], %s2236_s14, %s2236_s14, %s2237_s15  }
  0x41   : > { %p2090_p5 = pneg %p2089_p2  ;;  %p2096_p10 = por %p2095_p9, %p2094_p8 }
  0x43   : > { %p2097_p11 = pnand %p2096_p10, %p2090_p5 }
  0x45   : > { %2100 = shalt.err (!%p2097_p11)
}
  0x46   : > { %s2742_s7 = sld [smem:[#allocation25_spill]]  ;;  %s2112_s14 = scalar_lea.vmem %s458_s4, 16 }
  0x47   : > { %p2113_p12 = scmp.ne.s32.totalorder %s458_s4, %s2112_s14  ;;  %s2119_s15 = scalar_lea.vmem %s458_s4, 32 }
  0x48   : > { %p2120_p1 = scmp.lt.s32.totalorder %s458_s4, %s458_s4  ;;  %p2121_p3 = scmp.lt.s32.totalorder %s2119_s15, %s2112_s14 }
  0x49   : > { %p2115_p13 = pnand %p2113_p12, %p2374_p7 }
  0x4a   : > { %p2122_p4 = por %p2121_p3, %p2120_p1 }
  0x4b   : > { %p2116_p0 = pneg %p2115_p13 }
  0x4c   : > { %1888 = dma.hbm_to_vmem [thread:$0]  (!%p2366_p6), %s2742_s7, 16, %s447_s17, [#allocation9]  }
  0x4d   : > { %p2123_p2 = pnand %p2122_p4, %p2116_p0 }
  0x4f   : > { %2126 = shalt.err (!%p2123_p2)
}
  0x50   : > { %s2743_s8 = sld [smem:[#allocation26_spill]]  ;;  %s1682_s16 = sadd.s32 4294967294, %s2231_s21  }
  0x51   : > { %s2420_s30 = sadd.s32 1, %s2231_s21   ;;  %s67_s27 = sadd.s32 1, %s2227_s20 }
  0x52   : > { %2744 = sst [smem:[#allocation20_spill]] %s2420_s30  ;;  %s64_s17 = ssub.s32 %s2231_s21, %s2420_s30 }
  0x53   : > { %p74_p7 = scmp.ne.s32.totalorder %s2227_s20, %s2223_s19  ;;  %p65_p5 = scmp.eq.s32.totalorder %s64_s17, 0 }
  0x54   : > { %p75_p8 = scmp.eq.s32.totalorder %s2231_s21, 0  ;;  %p80_p9 = scmp.ne.s32.totalorder %s2223_s19, %s2219_s18 }
  0x55   : > { %p382_p10 = scmp.eq.s32.totalorder %s2352_s24, 1  ;;  %p2746_p12 = scmp.eq.s32.totalorder %s2352_s24, 0 }
  0x56   : > { %1891 = dma.hbm_to_vmem [thread:$0]  (!%p2366_p6), %s2743_s8, 16, %s458_s4, [#allocation12]  }
  0x57   : > { %s2432_s22 = scalar_select %p65_p5, %s2227_s20, %s67_s27  }
  0x58   : > { %p76_p11 = por %p75_p8, %p74_p7  ;;  %p2436_p13 = por %p2746_p12, %p80_p9 }
  0x59   : > { %2745 = sst [smem:[#allocation21_spill]] %s2432_s22  ;;  %p2440_p6 = por %p382_p10, %p74_p7 }
  0x5a   : > { %s2747_s23 = scalar_select %p2436_p13, 1, 0 }
  0x5b   : > { %s2748_s4 = scalar_select %p2440_p6, 1, 0 }
  0x5c   : > { %p388_p0 = scmp.eq.s32.totalorder %s1682_s16, 1  ;;  %p1905_p1 = scmp.lt.s32.totalorder %s2231_s21, 2 }
  0x5d   : > { %s493_s26 = sand.u32 1, %s2227_s20   ;;  %s1690_s14 = sshll.u32 %s2231_s21, 4 }
  0x5e   : > { %p2446_p3 = por %p388_p0, %p80_p9  ;;  %s2454_s28 = scalar_lea.hbm %s2705_s1, %s1690_s14 }
  0x5f   : > { %s496_s27 = scalar_lea.vmem [#allocation2], %s493_s26  ;;  %p2456_p4 = pnand %p1905_p1, %p76_p11 }
  0x60   : > { %s2749_s29 = scalar_select %p2446_p3, 1, 0 }
  0x61   : > { %s503_s17 = sshll.u32 %s496_s27, 4  ;;  %s494_s5 = scalar_lea.sflag [#allocation3], %s493_s26  ;;  %s504_s17 = int_to_ptr.vmem [resolvable:$true] %s503_s17 }
  0x62   : > { %s2127_s7 = scalar_lea.hbm %s2454_s28, 16  ;;  %p2129_p7 = pneg %p2456_p4 }
  0x63   : > { %p2128_p2 = scmp.ne.s32.totalorder %s2454_s28, %s2127_s7  ;;  %s2132_s6 = scalar_lea.hbm %s2705_s1, 32 }
  0x64   : > { %p2133_p9 = scmp.lt.s32.totalorder %s2454_s28, %s2705_s1  ;;  %p2134_p10 = scmp.lt.s32.totalorder %s2132_s6, %s2127_s7 }
  0x65   : > { %p2130_p5 = pnand %p2129_p7, %p2128_p2 }
  0x66   : > { %p2135_p11 = por %p2134_p10, %p2133_p9 }
  0x67   : > { %p2131_p8 = pneg %p2130_p5 }
  0x69   : > { %p2136_p12 = pnand %p2135_p11, %p2131_p8 }
  0x6b   : > { %2139 = shalt.err (!%p2136_p12)
}
  0x6c   : > { %s2140_s27 = scalar_lea.vmem %s504_s17, 16  ;;  %s2240_s26 = smov [#allocation2]  }
  0x6d   : > { %p2141_p0 = scmp.ne.s32.totalorder %s504_s17, %s2140_s27  ;;  %s2145_s20 = sshll.u32 %s2240_s26, 4  ;;  %s2146_s20 = int_to_ptr.vmem [resolvable:$false] %s2145_s20 }
  0x6e   : > { %s2147_s30 = scalar_lea.vmem %s2146_s20, 32  ;;  %p2148_p2 = scmp.lt.s32.totalorder %s504_s17, %s2146_s20 }
  0x6f   : > { %p2143_p1 = pnand %p2141_p0, %p2129_p7  ;;  %p2149_p5 = scmp.lt.s32.totalorder %s2147_s30, %s2140_s27 }
  0x71   : > { %p2144_p3 = pneg %p2143_p1  ;;  %p2150_p6 = por %p2149_p5, %p2148_p2 }
  0x73   : > { %p2151_p13 = pnand %p2150_p6, %p2144_p3 }
  0x75   : > { %2154 = shalt.err (!%p2151_p13)
}
  0x76   : > { %1895 = dma.hbm_to_vmem [thread:$0]  (!%p2456_p4), %s2454_s28, 16, %s504_s17, %s494_s5  }
  0x77   : > { %p2751_p8 = scmp.ne.s32.totalorder %s2736_s25, 0 }
  0x78   : > { %s2477_s7 = sand.u32 (!%p2751_p8), 1, %s2223_s19   ;;  %p2752_p7 = scmp.ne.s32.totalorder (!%p2751_p8), %s2747_s23, 0 }
  0x79   : > { %519 = sbr.rel (%p2751_p8) target bundleno = 2525 (0x9dd), region = 80  ;;  %s522_s8 = scalar_lea.sflag (!%p2751_p8), [#allocation3], %s2477_s7 }
  0x7a   : > { %s524_s22 = scalar_lea.vmem (!%p2751_p8), [#allocation2], %s2477_s7 }
  0x7e   : > { %2198 = dma.done.wait (%p2752_p7), %s522_s8, 16  }
  0x7f   : > { %2200 = vsyncadd (%p2752_p7), %s522_s8, 4294967280  ;;  %p2753_p13 = scmp.eq.s32.totalorder %s2352_s24, 0 }
  0x81   : > { %2202 = dma.done.wait (%p2753_p13), [#allocation6], 304   ;;  %p2754_p6 = pmov %p2753_p13 }
  0x83   : > { %2204 = vsyncadd (%p2754_p6), [#allocation6], 4294966992  ;;  %p2755_p3 = pmov %p2754_p6 }
  0x85   : > { %2206 = dma.done.wait (%p2755_p3), [#allocation9], 32   ;;  %p2756_p4 = pmov %p2755_p3 }
  0x86   : > { %p2757_p9 = pmov %p2755_p3 }
  0x87   : > { %2208 = vsyncadd (%p2756_p4), [#allocation9], 4294967264 }
  0x88   : > { %2210 = dma.done.wait (%p2757_p9), [#allocation12], 16   ;;  %p2758_p10 = pmov %p2755_p3 }
  0x89   : > { %p598_p11 = scmp.lt.s32.totalorder %s2352_s24, 1  ;;  %v2241_v0 = vmov 0   ;;  %v1961_v1 = vld [vmem:[%s2707_s3 + $0x1c] ss:$12 sps:$4 sm:$0xff]   ;;  %v1963_v2 = vld [vmem:[%s2707_s3 + $0x18] ss:$12 sps:$4 sm:$0xff]   ;;  %v622_v10 = vlaneseq }
  0x8a   : > { %2212 = vsyncadd (%p2758_p10), [#allocation12], 4294967280  ;;  %705 = vmatprep.mubr.bf16.mxu1 %v2241_v0  ;;  %1960 = vset.pattern.permute.xlu0 %v2241_v0  ;;  %v1964_v3 = vld [vmem:[%s2707_s3 + $0x4] ss:$12 sps:$4 sm:$0xff]   ;;  %v1966_v4 = vld [vmem:[%s2707_s3] ss:$12 sps:$4 sm:$0xff]  }
  0x8b   : > { %s2499_s5 = scalar_select %p598_p11, %s2352_s24, 1  ;;  %685 = vmatprep.subr.bf16.mxu1 %v1961_v1  ;;  %vm669_vm0 = vcmask 261120   ;;  %v2242_v7 = vmov 0.0   ;;  %vm2243_vm1 = vmmov 0   ;;  %v1967_v8 = vld [vmem:[%s2707_s3 + $0x20] ss:$12 sps:$4 sm:$0xff]  }
  0x8c   : > { %686 = vmatpush1.bf16.msra.mxu1 %v1963_v2  ;;  %1776 = vmatprep.subr.bf16.mxu0 %v2242_v7  ;;  %v1968_v9 = vld [vmem:[%s2707_s3 + $0x8] ss:$12 sps:$4 sm:$0xff]   ;;  %v2541_v11 = vshrl.u32 %v622_v10, 7  ;;  %v620_v13 = vld [vmem:[#allocation5] sm:$0x7]  ;;  %s2244_s28 = smov 120  }
  0x8d   : > { %s1698_s20 = sshll.u32 %s2499_s5, 3  ;;  %687 = vmatprep.subr.bf16.mxu1 %v1964_v3  ;;  %1778 = vmatprep.mubr.msk.bf16.mxu0 %vm2243_vm1, %v2242_v7  ;;  %vm796_vm2 = vcmask 64512   ;;  %s2246_s16 = smov 112   ;;  %vm1042_vm3 = vcmask 1043456   ;;  %v609_v50 = vld [vmem:[%s524_s22] sm:$0x1] }
  0x8e   : > { %s601_s17 = scalar_lea.vmem %s2704_s0, %s1698_s20  ;;  %v624_v12 = vsub.s32 0, %v2541_v11  ;;  %v628_v14 = vsub.s32 1, %v2541_v11  ;;  %v632_v30 = vsub.s32 2, %v2541_v11  ;;  %v610_v51 = vmul.f32 -1e+30, %v609_v50  ;;  %s2247_s22 = smov 8  }
  0x8f   : > { %v2519_v5 = vld [vmem:[%s601_s17] sm:$0xff]  ;;  %s2245_s17 = smov 104   ;;  %s2248_s14 = smov 16   ;;  %vm1237_vm4 = vcmask 130048   ;;  %vm1239_vm5 = vcmask 195584   ;;  %vm1453_vm6 = vcmask 523264  }
  0x90   : > { %v611_v6 = vpack.c.bf16 %v2519_v5, %v2519_v5  ;;  %688 = vmatpush1.bf16.msra.mxu1 %v1966_v4  ;;  %v625_v15 = vrot.slane %v620_v13, %v624_v12  ;;  %v629_v16 = vrot.slane %v620_v13, %v628_v14  ;;  %v633_v34 = vrot.slane %v620_v13, %v632_v30  ;;  %s2249_s15 = smov 24   ;;  %s605_s26 = scalar_lea.vmem %s2706_s2, %s1698_s20 }
  0x91   : > { %1768 = vmatprep.subr.bf16.mxu1 %v2242_v7  ;;  %v985_v52 = vrot.slane %v610_v51, %v624_v12  ;;  %s1697_s25 = sshll.u32 %s2477_s7, 3  ;;  %s2760_s6 = sld [smem:[#allocation28_spill]] }
  0x92   : > { %p2761_p0 = scmp.ne.s32.totalorder %s2748_s4, 0  ;;  %s2250_s5 = smov [#allocation13]  }
  0x93   : > { %1706 = vmatmul.mubr.msk.bf16.vlgmr.msra.gmra.mxu1 %vm669_vm0, %v611_v6  ;;  %s2159_s30 = sshll.u32 %s2250_s5, 4  ;;  %s2160_s30 = int_to_ptr.vmem [resolvable:$false] %s2159_s30 }
  0x94   : > { %1772 = vmatprep.mubr.msk.bf16.mxu1 %vm2243_vm1, %v2242_v7  ;;  %1769 = vmatpush3.bf16.msra.mxu1 %v1967_v8 }
  0x95   : > { %1770 = vmatprep.subr.bf16.mxu1 %v2242_v7 }
  0x98   : > { %1771 = vmatpush3.bf16.msra.mxu1 %v1968_v9 }
  0x99   : > { %1782 = vmatprep.subr.bf16.mxu1 %v2242_v7 }
  0x9b   : > { %1773 = vmatmul.mubr.msk.bf16.vlgmr.msra.gmra.mxu1 %vm669_vm0, %v611_v6 }
  0x9c   : > { %1784 = vmatprep.mubr.msk.bf16.mxu1 %vm2243_vm1, %v2242_v7 }
 0x153   : > { %v707_v17 = vpop.f32.mrf.mxu1 }
 0x154   : > { %v708_v18 = vadd.f32 %v707_v17, %v625_v15 }
 0x155   : > { %v709_v19 = vpop.f32.mrf.mxu1 }
 0x156   : > { %v710_v20 = vadd.f32 %v709_v19, %v629_v16  ;;  %755 = vrot.lane.b32.xlu1 %v708_v18, %s2244_s28  ;;  %v764_v25 = vpack.c.bf16 %v708_v18, %v708_v18 }
 0x157   : > { %v711_v21 = vpop.f32.mrf.mxu1 }
 0x158   : > { %769 = vrot.lane.b32.xlu0 %v710_v20, %s2244_s28  ;;  %v778_v22 = vpack.c.bf16 %v710_v20, %v710_v20 }
 0x159   : > { %v712_v23 = vpop.f32.mrf.mxu1 }
 0x15a   : > { %775 = vrot.lane.b32.xlu1 %v710_v20, %s2245_s17  ;;  %v801_v24 = vsel %vm796_vm2, %v778_v22, 0 }
 0x15b   : > { %1777 = vmatpush3.bf16.xpose.msra.mxu0 %v801_v24  ;;  %v748_v26 = vpop.f32.mrf.mxu1 }
 0x15c   : > { %772 = vrot.lane.b32.xlu0 %v710_v20, %s2246_s16  ;;  %1788 = vmatprep.subr.bf16.mxu0 %v2242_v7  ;;  %v2561_v39 = vadd.f32 %v748_v26, %v633_v34 }
 0x15d   : > { %v1774_v27 = vpop.f32.mrf.mxu1 }
 0x15e   : > { %761 = vrot.lane.b32.xlu1 %v708_v18, %s2245_s17  ;;  %v792_v43 = vpack.c.bf16 %v2561_v39, %v2561_v39 }
 0x15f   : > { %v751_v28 = vpop.f32.mrf.mxu1 }
 0x160   : > { %758 = vrot.lane.b32.xlu0 %v708_v18, %s2246_s16  ;;  %v1044_v47 = vsel %vm1042_vm3, %v792_v43, 0 }
 0x161   : > { %v1775_v29 = vpop.f32.mrf.mxu1 }
 0x162   : > { %1779 = vmatmul.mubr.msk.bf16.vlgmr.msra.gmra.mxu0 %vm796_vm2, %v764_v25 }
 0x163   : > { %1790 = vmatprep.mubr.msk.bf16.mxu0 %vm2243_vm1, %v2242_v7 }
 0x1c8   : > { %v756_v31 = vpop.permute.xlu1 %755 }
 0x1c9   : > { %v765_v42 = vpack.c.bf16 %v756_v31, %v756_v31 }
 0x1ca   : > { %v770_v32 = vpop.permute.xlu0 %769 }
 0x1cb   : > { %v779_v33 = vpack.c.bf16 %v770_v32, %v770_v32 }
 0x1cc   : > { %v776_v36 = vpop.permute.xlu1 %775 }
 0x1cd   : > { %v847_v35 = vsel %vm796_vm2, %v779_v33, 0  ;;  %v781_v40 = vpack.c.bf16 %v776_v36, %v776_v36 }
 0x1ce   : > { %1783 = vmatpush3.bf16.xpose.msra.mxu1 %v847_v35  ;;  %v773_v37 = vpop.permute.xlu0 %772 }
 0x1cf   : > { %v780_v38 = vpack.c.bf16 %v773_v37, %v773_v37  ;;  %1794 = vmatprep.subr.bf16.mxu1 %v2242_v7  ;;  %v939_v45 = vsel %vm796_vm2, %v781_v40, 0 }
 0x1d0   : > { %v762_v48 = vpop.permute.xlu1 %761 }
 0x1d1   : > { %v893_v41 = vsel %vm796_vm2, %v780_v38, 0  ;;  %v767_v49 = vpack.c.bf16 %v762_v48, %v762_v48 }
 0x1d2   : > { %1789 = vmatpush3.bf16.xpose.msra.mxu0 %v893_v41  ;;  %v759_v44 = vpop.permute.xlu0 %758 }
 0x1d3   : > { %1800 = vmatprep.subr.bf16.mxu0 %v2242_v7  ;;  %v766_v46 = vpack.c.bf16 %v759_v44, %v759_v44 }
 0x1d5   : > { %1785 = vmatmul.mubr.msk.bf16.vlgmr.msra.gmra.mxu1 %vm796_vm2, %v765_v42 }
 0x1d6   : > { %1795 = vmatpush3.bf16.xpose.msra.mxu1 %v939_v45  ;;  %1796 = vmatprep.mubr.msk.bf16.mxu1 %vm2243_vm1, %v2242_v7 }
 0x1d7   : > { %1806 = vmatprep.subr.bf16.mxu1 %v2242_v7 }
 0x1d9   : > { %1791 = vmatmul.mubr.msk.bf16.vlgmr.msra.gmra.mxu0 %vm796_vm2, %v766_v46 }
 0x1da   : > { %1801 = vmatpush3.bf16.msra.mxu0 %v1044_v47  ;;  %1802 = vmatprep.mubr.msk.bf16.mxu0 %vm2243_vm1, %v2242_v7 }
 0x1db   : > { %1812 = vmatprep.subr.bf16.mxu0 %v2242_v7 }
 0x1dd   : > { %1797 = vmatmul.mubr.msk.bf16.vlgmr.msra.gmra.mxu1 %vm796_vm2, %v767_v49 }
 0x1de   : > { %1808 = vmatprep.mubr.msk.bf16.mxu1 %vm2243_vm1, %v2242_v7 }
 0x222   : > { %v837_v53 = vpop.f32.mrf.mxu0 }
 0x223   : > { %v987_v54 = vadd.f32 %v985_v52, %v837_v53 }
 0x224   : > { %v1780_v55 = vpop.f32.mrf.mxu0 }
 0x225   : > { %v991_v56 = vsel %vm796_vm2, %v987_v54, -inf }
 0x226   : > { %992 = vmax.xlane.f32.xlu0 %v991_v56  ;;  %v840_v57 = vpop.f32.mrf.mxu0 }
 0x228   : > { %v1781_v58 = vpop.f32.mrf.mxu0 }
 0x295   : > { %v883_v59 = vpop.f32.mrf.mxu1 }
 0x296   : > { %v988_v60 = vadd.f32 %v985_v52, %v883_v59 }
 0x297   : > { %v1786_v61 = vpop.f32.mrf.mxu1 }
 0x298   : > { %v994_v62 = vsel %vm796_vm2, %v988_v60, -inf }
 0x299   : > { %995 = vmax.xlane.f32.xlu1 %v994_v62  ;;  %v886_v63 = vpop.f32.mrf.mxu1  ;;  %v929_v0 = vpop.f32.mrf.mxu0 }
 0x29a   : > { %v989_v1 = vadd.f32 %v985_v52, %v929_v0  ;;  %v1969_v0 = vld [vmem:[#allocation7 + $0x8] sm:$0xff]  }
 0x29b   : > { %v1787_v2 = vpop.f32.mrf.mxu1  ;;  %v1792_v3 = vpop.f32.mrf.mxu0 }
 0x29c   : > { %v997_v4 = vsel %vm796_vm2, %v989_v1, -inf }
 0x29d   : > { %v975_v6 = vpop.f32.mrf.mxu1  ;;  %998 = vmax.xlane.f32.xlu0 %v997_v4  ;;  %v932_v8 = vpop.f32.mrf.mxu0 }
 0x29e   : > { %v990_v9 = vadd.f32 %v985_v52, %v975_v6 }
 0x29f   : > { %v1793_v10 = vpop.f32.mrf.mxu0  ;;  %v1798_v11 = vpop.f32.mrf.mxu1 }
 0x2a0   : > { %v1000_v12 = vsel %vm796_vm2, %v990_v9, -inf }
 0x2a1   : > { %v978_v13 = vpop.f32.mrf.mxu1  ;;  %1001 = vmax.xlane.f32.xlu0 %v1000_v12 }
 0x2a3   : > { %v1799_v14 = vpop.f32.mrf.mxu1 }
 0x2aa   : > { %783 = vrot.lane.b32.xlu1 %v2561_v39, %s2244_s28  ;;  %s2759_s28 = sld [smem:[#allocation27_spill]] }
 0x2af   : > { %v993_v15 = vpop.xlane.xlu0 %992 }
 0x2b0   : > { %v1003_v16 = vsub.f32 %v987_v54, %v993_v15 }
 0x2b2   : > { %v1007_v17 = vmul.f32 1.442695, %v1003_v16 }
 0x2b4   : > { %1977 = vpow2.f32 %v1007_v17 }
 0x2c1   : > { %v1978_v18 = vpop.eup %1977 }
 0x2c2   : > { %v1015_v19 = vsel %vm796_vm2, %v1978_v18, 0.0 }
 0x2ce   : > { %1016 = vadd.xlane.f32.xlu1 %v1015_v19 }
 0x322   : > { %v996_v20 = vpop.xlane.xlu1 %995 }
 0x323   : > { %v1004_v21 = vsub.f32 %v988_v60, %v996_v20 }
 0x325   : > { %v1009_v22 = vmul.f32 1.442695, %v1004_v21 }
 0x326   : > { %v784_v23 = vpop.permute.xlu1 %783  ;;  %v999_v24 = vpop.xlane.xlu0 %998 }
 0x327   : > { %1979 = vpow2.f32 %v1009_v22  ;;  %v793_v25 = vpack.c.bf16 %v784_v23, %v784_v23  ;;  %v1005_v26 = vsub.f32 %v989_v1, %v999_v24  ;;  %v1970_v1 = vld [vmem:[#allocation7] sm:$0xff]   ;;  %v1716_v23 = vld [vmem:[#allocation8] ss:$0 sm:$0xff] }
 0x329   : > { %v1090_v27 = vsel %vm1042_vm3, %v793_v25, 0  ;;  %v1011_v28 = vmul.f32 1.442695, %v1005_v26 }
 0x32a   : > { %1807 = vmatpush3.bf16.msra.mxu1 %v1090_v27  ;;  %v1002_v29 = vpop.xlane.xlu0 %1001 }
 0x32b   : > { %1981 = vpow2.f32 %v1011_v28  ;;  %v1006_v30 = vsub.f32 %v990_v9, %v1002_v29  ;;  %1818 = vmatprep.subr.bf16.mxu1 %v2242_v7 }
 0x32d   : > { %v1013_v31 = vmul.f32 1.442695, %v1006_v30 }
 0x32f   : > { %1983 = vpow2.f32 %v1013_v31  ;;  %v608_v31 = vld [vmem:[%s605_s26] sm:$0xff]  ;;  %s1530_s26 = scalar_lea.sflag [#allocation4], %s2477_s7 }
 0x334   : > { %v1980_v32 = vpop.eup %1979 }
 0x335   : > { %v1018_v33 = vsel %vm796_vm2, %v1980_v32, 0.0 }
 0x336   : > { %1019 = vadd.xlane.f32.xlu0 %v1018_v33 }
 0x338   : > { %v1982_v34 = vpop.eup %1981 }
 0x339   : > { %v1021_v35 = vsel %vm796_vm2, %v1982_v34, 0.0 }
 0x33a   : > { %1022 = vadd.xlane.f32.xlu1 %v1021_v35 }
 0x33c   : > { %v1984_v36 = vpop.eup %1983 }
 0x33d   : > { %v1024_v37 = vsel %vm796_vm2, %v1984_v36, 0.0 }
 0x33e   : > { %1025 = vadd.xlane.f32.xlu0 %v1024_v37  ;;  %v1972_v37 = vld [vmem:[%s2713_s9] sm:$0xff]  }
 0x34b   : > { %789 = vrot.lane.b32.xlu1 %v2561_v39, %s2245_s17  ;;  %s1735_s17 = sshll.u32 %s2352_s24, 7  ;;  %s2161_s24 = scalar_lea.vmem %s2160_s30, 256 }
 0x34c   : > { %s1541_s27 = scalar_lea.hbm %s2760_s6, %s1735_s17 }
 0x354   : > { %786 = vrot.lane.b32.xlu0 %v2561_v39, %s2246_s16  ;;  %s597_s16 = scalar_lea.vmem [#allocation13], %s1697_s25 }
 0x357   : > { %v1017_v38 = vpop.xlane.xlu1 %1016 }
 0x358   : > { %1985 = vrcp.f32 %v1017_v38  ;;  %v1973_v38 = vld [vmem:[%s2715_s11 + $0x18] sm:$0xff]  }
 0x365   : > { %v1986_v40 = vpop.eup %1985 }
 0x366   : > { %v1031_v41 = vmul.f32 %v1986_v40, %v1978_v18  ;;  %v1974_v40 = vld [vmem:[%s2715_s11 + $0x10] sm:$0xff]  }
 0x368   : > { %v1035_v42 = vpack.c.bf16 %v1031_v41, %v1031_v41 }
 0x36a   : > { %1803 = vmatmul.mubr.msk.bf16.vlgmr.msra.gmra.mxu0 %vm796_vm2, %v1035_v42 }
 0x36b   : > { %1814 = vmatprep.mubr.msk.bf16.mxu0 %vm2243_vm1, %v2242_v7 }
 0x3bf   : > { %v1020_v43 = vpop.xlane.xlu0 %1019 }
 0x3c0   : > { %1987 = vrcp.f32 %v1020_v43 }
 0x3c3   : > { %v1023_v44 = vpop.xlane.xlu1 %1022 }
 0x3c4   : > { %1989 = vrcp.f32 %v1023_v44 }
 0x3c7   : > { %v1026_v45 = vpop.xlane.xlu0 %1025  ;;  %v790_v46 = vpop.permute.xlu1 %789 }
 0x3c8   : > { %1991 = vrcp.f32 %v1026_v45  ;;  %v795_v49 = vpack.c.bf16 %v790_v46, %v790_v46  ;;  %v1720_v45 = vld [vmem:[#allocation10] ss:$0 sm:$0xff] }
 0x3ca   : > { %v1182_v54 = vsel %vm1042_vm3, %v795_v49, 0 }
 0x3cb   : > { %v787_v47 = vpop.permute.xlu0 %786 }
 0x3cc   : > { %v794_v48 = vpack.c.bf16 %v787_v47, %v787_v47  ;;  %v1721_v47 = vld [vmem:[#allocation11] ss:$0 sm:$0xff] }
 0x3cd   : > { %v1988_v39 = vpop.eup %1987 }
 0x3ce   : > { %v1136_v50 = vsel %vm1042_vm3, %v794_v48, 0  ;;  %v1032_v51 = vmul.f32 %v1988_v39, %v1980_v32 }
 0x3cf   : > { %1813 = vmatpush3.bf16.msra.mxu0 %v1136_v50 }
 0x3d0   : > { %v1036_v52 = vpack.c.bf16 %v1032_v51, %v1032_v51  ;;  %1824 = vmatprep.subr.bf16.mxu0 %v2242_v7 }
 0x3d1   : > { %v1990_v53 = vpop.eup %1989 }
 0x3d2   : > { %1809 = vmatmul.mubr.msk.bf16.vlgmr.msra.gmra.mxu1 %vm796_vm2, %v1036_v52  ;;  %v1033_v55 = vmul.f32 %v1990_v53, %v1982_v34  ;;  %v1975_v52 = vld [vmem:[%s2715_s11 + $0x8] sm:$0xff]   ;;  %v1976_v53 = vld [vmem:[%s2715_s11] sm:$0xff]  }
 0x3d3   : > { %1819 = vmatpush3.bf16.msra.mxu1 %v1182_v54  ;;  %1820 = vmatprep.mubr.msk.bf16.mxu1 %vm2243_vm1, %v2242_v7  ;;  %v1722_v54 = vld [vmem:[%s2714_s10] ss:$0 sm:$0xff] }
 0x3d4   : > { %v1037_v56 = vpack.c.bf16 %v1033_v55, %v1033_v55  ;;  %1832 = vmatprep.subr.bf16.mxu1 %v2242_v7 }
 0x3d5   : > { %v1992_v57 = vpop.eup %1991 }
 0x3d6   : > { %1815 = vmatmul.mubr.msk.bf16.vlgmr.msra.gmra.mxu0 %vm796_vm2, %v1037_v56  ;;  %v1034_v58 = vmul.f32 %v1992_v57, %v1984_v36 }
 0x3d7   : > { %1828 = vmatprep.mubr.msk.bf16.mxu0 %vm2243_vm1, %v2242_v7  ;;  %1825 = vmatpush3.bf16.msra.mxu0 %v1969_v0 }
 0x3d8   : > { %v1038_v59 = vpack.c.bf16 %v1034_v58, %v1034_v58  ;;  %1826 = vmatprep.subr.bf16.mxu0 %v2242_v7 }
 0x3da   : > { %1821 = vmatmul.mubr.msk.bf16.vlgmr.msra.gmra.mxu1 %vm796_vm2, %v1038_v59 }
 0x3db   : > { %1836 = vmatprep.mubr.msk.bf16.mxu1 %vm2243_vm1, %v2242_v7  ;;  %1827 = vmatpush3.bf16.msra.mxu0 %v1970_v1 }
 0x3dc   : > { %1840 = vmatprep.subr.bf16.mxu0 %v2242_v7 }
 0x42a   : > { %v1080_v60 = vpop.f32.mrf.mxu0 }
 0x42c   : > { %v1804_v61 = vpop.f32.mrf.mxu0 }
 0x42e   : > { %v1083_v62 = vpop.f32.mrf.mxu0 }
 0x430   : > { %v1805_v63 = vpop.f32.mrf.mxu0 }
 0x492   : > { %v1126_v2 = vpop.f32.mrf.mxu1 }
 0x493   : > { %1225 = vrot.lane.b32.xlu1 %v1126_v2, %s2247_s22  ;;  %s1543_s22 = sshll.u32 %s597_s16, 4  ;;  %s1544_s22 = int_to_ptr.vmem [resolvable:$true] %s1543_s22 }
 0x494   : > { %v1810_v3 = vpop.f32.mrf.mxu1  ;;  %s2155_s8 = scalar_lea.vmem %s1544_s22, 128  ;;  %p2162_p5 = scmp.lt.s32.totalorder %s1544_s22, %s2160_s30 }
 0x495   : > { %p2156_p12 = scmp.ne.s32.totalorder %s1544_s22, %s2155_s8  ;;  %p2163_p8 = scmp.lt.s32.totalorder %s2161_s24, %s2155_s8 }
 0x496   : > { %v1129_v4 = vpop.f32.mrf.mxu1  ;;  %v1172_v6 = vpop.f32.mrf.mxu0 }
 0x497   : > { %1229 = vrot.lane.b32.xlu0 %v1172_v6, %s2248_s14  ;;  %p2157_p1 = pnand %p2156_p12, %p2761_p0  ;;  %p2164_p7 = por %p2163_p8, %p2162_p5 }
 0x498   : > { %v1811_v8 = vpop.f32.mrf.mxu1  ;;  %v1816_v9 = vpop.f32.mrf.mxu0 }
 0x499   : > { %p2158_p2 = pneg %p2157_p1 }
 0x49a   : > { %v1175_v10 = vpop.f32.mrf.mxu0  ;;  %v1218_v11 = vpop.f32.mrf.mxu1 }
 0x49b   : > { %1233 = vrot.lane.b32.xlu1 %v1218_v11, %s2249_s15  ;;  %p2165_p13 = pnand %p2164_p7, %p2158_p2 }
 0x49c   : > { %v1817_v12 = vpop.f32.mrf.mxu0  ;;  %v1822_v13 = vpop.f32.mrf.mxu1 }
 0x49e   : > { %v1221_v14 = vpop.f32.mrf.mxu1 }
 0x4a0   : > { %v1823_v15 = vpop.f32.mrf.mxu1 }
 0x505   : > { %v1226_v16 = vpop.permute.xlu1 %1225 }
 0x506   : > { %v1236_v18 = vsel %vm796_vm2, %v1080_v60, %v1226_v16  ;;  %v1732_v16 = vld [vmem:[%s2717_s13] ss:$0 sm:$0xff] }
 0x509   : > { %v1230_v17 = vpop.permute.xlu0 %1229 }
 0x50a   : > { %v1238_v19 = vsel %vm1237_vm4, %v1236_v18, %v1230_v17  ;;  %v1733_v18 = vld [vmem:[%s2759_s28] ss:$0 sm:$0xff] }
 0x50d   : > { %v1234_v20 = vpop.permute.xlu1 %1233 }
 0x50e   : > { %v1240_v21 = vsel %vm1239_vm5, %v1238_v19, %v1234_v20 }
 0x50f   : > { %v1241_v22 = vpack.c.bf16 %v1240_v21, %v1240_v21 }
 0x511   : > { %1829 = vmatmul.mubr.msk.bf16.vlgmr.msra.gmra.mxu0 %vm669_vm0, %v1241_v22 }
 0x512   : > { %1848 = vmatprep.mubr.msk.bf16.mxu0 %vm2243_vm1, %v2242_v7  ;;  %1841 = vmatpush3.bf16.msra.mxu0 %v1973_v38 }
 0x513   : > { %1842 = vmatprep.subr.bf16.mxu0 %v2242_v7 }
 0x516   : > { %1843 = vmatpush3.bf16.msra.mxu0 %v1974_v40 }
 0x517   : > { %1844 = vmatprep.subr.bf16.mxu0 %v2242_v7 }
 0x51a   : > { %1845 = vmatpush3.bf16.msra.mxu0 %v1975_v52 }
 0x51b   : > { %1846 = vmatprep.subr.bf16.mxu0 %v2242_v7 }
 0x51e   : > { %1847 = vmatpush3.bf16.msra.mxu0 %v1976_v53 }
 0x5d1   : > { %v1302_v24 = vpop.f32.mrf.mxu0 }
 0x5d2   : > { %v1303_v25 = vadd.f32 %v1716_v23, %v1302_v24 }
 0x5d3   : > { %v1830_v26 = vpop.f32.mrf.mxu0 }
 0x5d4   : > { %v1308_v27 = vadd.f32 %v1303_v25, %v2519_v5  ;;  %v1971_v5 = vld [vmem:[%s2713_s9 + $0x8] sm:$0xff]  }
 0x5d5   : > { %v1305_v28 = vpop.f32.mrf.mxu0  ;;  %1833 = vmatpush3.bf16.msra.mxu1 %v1971_v5 }
 0x5d6   : > { %v1311_v29 = vsel %vm669_vm0, %v1308_v27, 0.0  ;;  %1834 = vmatprep.subr.bf16.mxu1 %v2242_v7  ;;  %v1726_v7 = vld [vmem:[%s2716_s12] ss:$0 sm:$0xff] }
 0x5d7   : > { %1312 = vadd.xlane.f32.xlu0 %v1311_v29  ;;  %v1831_v30 = vpop.f32.mrf.mxu0 }
 0x5d9   : > { %1835 = vmatpush3.bf16.msra.mxu1 %v1972_v37 }
 0x5ed   : > { %1341 = vperm.xlu0 %1960, %v608_v31  }
 0x660   : > { %v1313_v32 = vpop.xlane.xlu0 %1312 }
 0x661   : > { %v1315_v33 = vmul.f32 0.03125, %v1313_v32 }
 0x663   : > { %v1316_v34 = vsub.f32 %v1308_v27, %v1315_v33 }
 0x665   : > { %v1317_v35 = vmul.f32 %v1316_v34, %v1316_v34 }
 0x667   : > { %v1318_v36 = vsel %vm669_vm0, %v1317_v35, 0.0 }
 0x668   : > { %1319 = vadd.xlane.f32.xlu1 %v1318_v36  ;;  %v1342_v39 = vpop.permute.xlu0 %1341 }
 0x6f1   : > { %v1320_v41 = vpop.xlane.xlu1 %1319 }
 0x6f2   : > { %v1321_v42 = vmul.f32 0.03125, %v1320_v41 }
 0x6f4   : > { %v1322_v43 = vadd.f32 1e-05, %v1321_v42 }
 0x6f6   : > { %1993 = vrsqrt.f32 %v1322_v43 }
 0x703   : > { %v1994_v44 = vpop.eup %1993 }
 0x704   : > { %v1324_v46 = vmul.f32 %v1994_v44, %v1316_v34 }
 0x706   : > { %v1331_v48 = vmul.f32 %v1720_v45, %v1324_v46 }
 0x708   : > { %v1338_v49 = vadd.f32 %v1721_v47, %v1331_v48 }
 0x70a   : > { %v1344_v50 = vmul.f32 %v1342_v39, %v1338_v49 }
 0x70c   : > { %v1345_v51 = vpack.c.bf16 %v1344_v50, %v1344_v50 }
 0x70e   : > { %1837 = vmatmul.mubr.msk.bf16.vlgmr.msra.gmra.mxu1 %vm669_vm0, %v1345_v51 }
 0x7ce   : > { %v1406_v55 = vpop.f32.mrf.mxu1 }
 0x7cf   : > { %v1407_v56 = vadd.f32 %v1722_v54, %v1406_v55 }
 0x7d0   : > { %v1838_v57 = vpop.f32.mrf.mxu1 }
 0x7d1   : > { %v1412_v58 = vmax.f32 %v1407_v56, 0.0 }
 0x7d2   : > { %v1409_v59 = vpop.f32.mrf.mxu1 }
 0x7d3   : > { %v1413_v60 = vpack.c.bf16 %v1412_v58, %v1412_v58 }
 0x7d4   : > { %v1839_v61 = vpop.f32.mrf.mxu1 }
 0x7d5   : > { %1849 = vmatmul.mubr.msk.bf16.vlgmr.msra.gmra.mxu0 %vm1453_vm6, %v1413_v60 }
 0x895   : > { %v1491_v62 = vpop.f32.mrf.mxu0 }
 0x896   : > { %v1492_v63 = vadd.f32 %v1726_v7, %v1491_v62 }
 0x897   : > { %v1850_v0 = vpop.f32.mrf.mxu0 }
 0x898   : > { %v1497_v1 = vadd.f32 %v1492_v63, %v1344_v50 }
 0x899   : > { %v1494_v2 = vpop.f32.mrf.mxu0 }
 0x89a   : > { %v1500_v3 = vsel %vm669_vm0, %v1497_v1, 0.0 }
 0x89b   : > { %1501 = vadd.xlane.f32.xlu1 %v1500_v3  ;;  %v1851_v4 = vpop.f32.mrf.mxu0 }
 0x924   : > { %v1502_v6 = vpop.xlane.xlu1 %1501 }
 0x925   : > { %v1503_v8 = vmul.f32 0.03125, %v1502_v6 }
 0x927   : > { %v1504_v9 = vsub.f32 %v1497_v1, %v1503_v8 }
 0x929   : > { %v1505_v10 = vmul.f32 %v1504_v9, %v1504_v9 }
 0x92b   : > { %v1506_v11 = vsel %vm669_vm0, %v1505_v10, 0.0 }
 0x92c   : > { %1507 = vadd.xlane.f32.xlu1 %v1506_v11 }
 0x9b5   : > { %v1508_v12 = vpop.xlane.xlu1 %1507 }
 0x9b6   : > { %v1509_v13 = vmul.f32 0.03125, %v1508_v12 }
 0x9b8   : > { %v1510_v14 = vadd.f32 1e-05, %v1509_v13 }
 0x9ba   : > { %1995 = vrsqrt.f32 %v1510_v14 }
 0x9c7   : > { %v1996_v15 = vpop.eup %1995 }
 0x9c8   : > { %v1512_v17 = vmul.f32 %v1996_v15, %v1504_v9 }
 0x9ca   : > { %v1519_v19 = vmul.f32 %v1732_v16, %v1512_v17 }
 0x9cc   : > { %v1526_v20 = vadd.f32 %v1733_v18, %v1519_v19 }
 0x9ce   : > { %v1527_v21 = vmul.f32 %v1526_v20, %v1342_v39 }
 0x9d0   : > { %1528 = vst.msk [vmem:[%s597_s16] sm:$0xff] %vm669_vm0, %v1527_v21 }
 0x9d1   : > { %2168 = shalt.err (!%p2165_p13)
}
 0x9d2   : > { %s2169_s25 = scalar_lea.hbm %s1541_s27, 128  ;;  %s2173_s23 = scalar_lea.hbm %s2760_s6, 256 }
 0x9d3   : > { %p2170_p6 = scmp.ne.s32.totalorder %s1541_s27, %s2169_s25  ;;  %p2174_p9 = scmp.lt.s32.totalorder %s1541_s27, %s2760_s6 }
 0x9d4   : > { %p2175_p10 = scmp.lt.s32.totalorder %s2173_s23, %s2169_s25 }
 0x9d5   : > { %p2171_p3 = pnand %p2170_p6, %p2761_p0 }
 0x9d6   : > { %p2176_p11 = por %p2175_p10, %p2174_p9 }
 0x9d7   : > { %p2172_p4 = pneg %p2171_p3 }
 0x9d9   : > { %p2177_p12 = pnand %p2176_p11, %p2172_p4 }
 0x9db   : > { %2180 = shalt.err (!%p2177_p12)
}
 0x9dc   : > { %1874 = dma.vmem_to_hbm [thread:$0]  (%p2761_p0), %s1544_s22, 128, %s1541_s27, %s1530_s26  }
 0x9dd PF: > { %s1555_s16 = sand.u32 1, %s2219_s18   ;;  %p2762_p1 = scmp.ne.s32.totalorder %s2749_s29, 0 }
 0x9de   : > { %p2763_p2 = scmp.ge.s32.totalorder %s2231_s21, 2  ;;  %s1556_s14 = scalar_lea.sflag [#allocation4], %s1555_s16 }
 0x9e0   : > { %p1897_p5 = pnand %p2763_p2, %p2762_p1 }
 0x9e2   : > { %p1898_p8 = pneg %p1897_p5 }
 0x9e4   : > { %2214 = dma.done.wait (%p1898_p8), %s1556_s14, 128  }
 0x9e5   : > { %2216 = vsyncadd (%p1898_p8), %s1556_s14, 4294967168  ;;  %s2764_s21 = sld [smem:[#allocation20_spill]]  ;;  %s2767_s18 = smov %s2223_s19 }
 0x9e6   : > { %s2765_s15 = sld [smem:[#allocation19_spill]] }
 0x9e7   : > { %s2766_s20 = sld [smem:[#allocation21_spill]] }
 0x9eb   : > { %p31_p7 = scmp.ge.s32.totalorder %s2764_s21, 4  }
 0x9ec   : > { %s2768_s19 = smov %s2765_s15 }
 0x9ed   :  { %33 = sbr.rel (!%p31_p7) target bundleno = 16 (0x10), region = 151 }
 0x9f2   :  { %1561 = vsyncpa [#allocation3], 1 }
 0x9f3   :  { %1563 = vsyncpa [#allocation3 + $0x1], 1 }
 0x9f4   :  { %1564 = vsyncpa [#allocation6], 1 }
 0x9f5   :  { %1565 = vsyncpa [#allocation9], 1 }
 0x9f6   :  { %1566 = vsyncpa [#allocation12], 1 }
 0x9f7   :  { %1567 = vsyncpa [#allocation4], 1 }
 0x9f8   :  { %1569 = vsyncpa [#allocation4 + $0x1], 1 }

// kernel: tpu_custom_call.1
= control target key start
LH: loop header
LB: loop body
LE: loop exit
PB: predicated region body
PF: predicated region fallthrough
CT: control target
= control target key end

     0   :  { %s2704_s0 = inlined_call_operand.vmem [shape: f32[2,8,32], index: 0, kind: input, shape index: {}]   ;;  %s2705_s1 = inlined_call_operand.hbm [shape: f32[2,1,8], index: 1, kind: input, shape index: {}]   ;;  %s2706_s2 = inlined_call_operand.vmem [shape: f32[2,8,1], index: 2, kind: input, shape index: {}]   ;;  %s2707_s3 = inlined_call_operand.vmem [shape: bf16[32,384], index: 3, kind: input, shape index: {}]   ;;  %s2708_s4 = inlined_call_operand.hbm [shape: f32[1,384], index: 4, kind: input, shape index: {}]   ;;  %s2709_s5 = inlined_call_operand.hbm [shape: bf16[32,32], index: 5, kind: input, shape index: {}]   ;;  %s2710_s6 = inlined_call_operand.hbm [shape: f32[1,32], index: 6, kind: input, shape index: {}]   ;;  %s2711_s7 = inlined_call_operand.hbm [shape: f32[1,32], index: 7, kind: input, shape index: {}]   ;;  %s2712_s8 = inlined_call_operand.hbm [shape: f32[1,32], index: 8, kind: input, shape index: {}]   ;;  %s2713_s9 = inlined_call_operand.vmem [shape: bf16[32,64], index: 9, kind: input, shape index: {}]   ;;  %s2714_s10 = inlined_call_operand.vmem [shape: f32[1,64], index: 10, kind: input, shape index: {}]   ;;  %s2715_s11 = inlined_call_operand.vmem [shape: bf16[64,32], index: 11, kind: input, shape index: {}]   ;;  %s2716_s12 = inlined_call_operand.vmem [shape: f32[1,32], index: 12, kind: input, shape index: {}]   ;;  %s2717_s13 = inlined_call_operand.vmem [shape: f32[1,32], index: 13, kind: input, shape index: {}]   ;;  %s2718_s14 = inlined_call_operand.vmem [shape: f32[1,32], index: 14, kind: input, shape index: {}]   ;;  %s2719_s15 = inlined_call_operand.hbm [shape: f32[2,8,32], index: 15, kind: output, shape index: {}]  }
   0x1   :  { %2728 = sst [smem:[#allocation22_spill]] %s2708_s4 }
   0x2   :  { %2729 = sst [smem:[#allocation23_spill]] %s2709_s5 }
   0x3   :  { %2730 = sst [smem:[#allocation24_spill]] %s2710_s6 }
   0x4   :  { %2731 = sst [smem:[#allocation25_spill]] %s2711_s7 }
   0x5   :  { %2732 = sst [smem:[#allocation26_spill]] %s2712_s8 }
   0x6   :  { %2733 = sst [smem:[#allocation27_spill]] %s2718_s14 }
   0x7   :  { %2734 = sst [smem:[#allocation28_spill]] %s2719_s15 }
   0x8   :  { %20 = vsyncpa [#allocation3], 0 }
   0x9   :  { %22 = vsyncpa [#allocation3 + $0x1], 0 }
   0xa   :  { %23 = vsyncpa [#allocation6], 0 }
   0xb   :  { %24 = vsyncpa [#allocation9], 0 }
   0xc   :  { %25 = vsyncpa [#allocation12], 0 }
   0xd   :  { %26 = vsyncpa [#allocation4], 0 }
   0xe   :  { %28 = vsyncpa [#allocation4 + $0x1], 0  ;;  %s2331_s18 = smov 0   ;;  %s2333_s19 = smov 0  }
   0xf   :  { %s2335_s20 = smov 0   ;;  %s2337_s21 = smov 0  }
  0x10 LB: > { %2735 = sst [smem:[#allocation19_spill]] %s2227_s20  ;;  %s2233_s22 = smov [#allocation5]   ;;  %s2231_s21 = sphi %s2337_s21, %s2764_s21   ;;  %s2227_s20 = sphi %s2335_s20, %s2766_s20   ;;  %s2223_s19 = sphi %s2333_s19, %s2768_s19   ;;  %s2219_s18 = sphi %s2331_s18, %s2767_s18  }
  0x11   : > { %s411_s23 = sshll.u32 %s2233_s22, 4  ;;  %s2352_s24 = sadd.s32 4294967295, %s2231_s21   ;;  %s412_s23 = int_to_ptr.vmem [resolvable:$true] %s411_s23 }
  0x12   : > { %p1683_p0 = scmp.ge.s32.totalorder %s2231_s21, 1  ;;  %p2721_p1 = scmp.eq.s32.totalorder %s2352_s24, 0 }
  0x13   : > { %p395_p2 = scmp.lt.s32.totalorder %s2231_s21, 3  ;;  %s2234_s26 = smov [#allocation8]  }
  0x14   : > { %s435_s27 = sshll.u32 %s2234_s26, 4  ;;  %s2235_s28 = smov [#allocation7]   ;;  %s436_s27 = int_to_ptr.vmem [resolvable:$true] %s435_s27 }
  0x15   : > { %p2357_p3 = pnand %p1683_p0, %p395_p2  ;;  %s421_s29 = sshll.u32 %s2235_s28, 4  ;;  %s2370_s29 = int_to_ptr.vmem [resolvable:$true] %s421_s29 }
  0x16   : > { %s2008_s17 = scalar_lea.vmem %s412_s23, 48  ;;  %s2015_s22 = scalar_lea.vmem %s412_s23, 64 }
  0x17   : > { %s2736_s25 = scalar_select %p2357_p3, 1, 0 }
  0x18   : > { %p1876_p5 = pneg %p2357_p3  ;;  %p2009_p8 = scmp.ne.s32.totalorder %s412_s23, %s2008_s17 }
  0x19   : > { %p2016_p11 = scmp.lt.s32.totalorder %s412_s23, %s412_s23  ;;  %p2017_p12 = scmp.lt.s32.totalorder %s2015_s22, %s2008_s17 }
  0x1a   : > { %p2366_p6 = pnand %p1876_p5, %p2721_p1 }
  0x1b   : > { %p2018_p13 = por %p2017_p12, %p2016_p11 }
  0x1c   : > { %p2374_p7 = pneg %p2366_p6 }
  0x1e   : > { %p2011_p9 = pnand %p2009_p8, %p2374_p7 }
  0x20   : > { %p2012_p10 = pneg %p2011_p9 }
  0x22   : > { %p2019_p0 = pnand %p2018_p13, %p2012_p10 }
  0x24   : > { %2022 = shalt.err (!%p2019_p0)
}
  0x25   : > { %s2739_s4 = sld [smem:[#allocation22_spill]]  ;;  %s2034_s15 = scalar_lea.vmem %s436_s27, 16 }
  0x26   : > { %p2035_p2 = scmp.ne.s32.totalorder %s436_s27, %s2034_s15  ;;  %s2041_s14 = scalar_lea.vmem %s436_s27, 32 }
  0x27   : > { %p2042_p8 = scmp.lt.s32.totalorder %s436_s27, %s436_s27  ;;  %p2043_p9 = scmp.lt.s32.totalorder %s2041_s14, %s2034_s15 }
  0x28   : > { %p2037_p5 = pnand %p2035_p2, %p2374_p7 }
  0x29   : > { %p2044_p1 = por %p2043_p9, %p2042_p8 }
  0x2a   : > { %p2038_p4 = pneg %p2037_p5 }
  0x2b   : > { %1879 = dma.hbm_to_vmem [thread:$0]  (!%p2366_p6), %s2739_s4, 48, %s412_s23, [#allocation6]  }
  0x2c   : > { %p2045_p3 = pnand %p2044_p1, %p2038_p4 }
  0x2e   : > { %2048 = shalt.err (!%p2045_p3)
}
  0x2f   : > { %s2740_s6 = sld [smem:[#allocation24_spill]]  ;;  %s2060_s23 = scalar_lea.vmem %s2370_s29, 256 }
  0x30   : > { %p2061_p10 = scmp.ne.s32.totalorder %s2370_s29, %s2060_s23  ;;  %p2068_p13 = scmp.lt.s32.totalorder %s2370_s29, %s2370_s29 }
  0x31   : > { %p2069_p0 = scmp.lt.s32.totalorder %s2060_s23, %s2060_s23 }
  0x32   : > { %p2063_p11 = pnand %p2061_p10, %p2374_p7 }
  0x33   : > { %p2070_p1 = por %p2069_p0, %p2068_p13 }
  0x34   : > { %p2064_p12 = pneg %p2063_p11 }
  0x35   : > { %1885 = dma.hbm_to_vmem [thread:$0]  (!%p2366_p6), %s2740_s6, 16, %s436_s27, [#allocation9]  }
  0x36   : > { %p2071_p3 = pnand %p2070_p1, %p2064_p12 }
  0x38   : > { %2074 = shalt.err (!%p2071_p3)
}
  0x39   : > { %s2236_s14 = smov 64   ;;  %s2237_s15 = smov 4  }
  0x3a   : > { %s2741_s5 = sld [smem:[#allocation23_spill]]  ;;  %s2238_s27 = smov [#allocation10]  }
  0x3b   : > { %s446_s17 = sshll.u32 %s2238_s27, 4  ;;  %s2239_s22 = smov [#allocation11]   ;;  %s447_s17 = int_to_ptr.vmem [resolvable:$true] %s446_s17 }
  0x3c   : > { %s457_s4 = sshll.u32 %s2239_s22, 4  ;;  %s2086_s6 = scalar_lea.vmem %s447_s17, 16  ;;  %s458_s4 = int_to_ptr.vmem [resolvable:$true] %s457_s4 }
  0x3d   : > { %p2087_p4 = scmp.ne.s32.totalorder %s447_s17, %s2086_s6  ;;  %s2093_s23 = scalar_lea.vmem %s447_s17, 32 }
  0x3e   : > { %p2094_p8 = scmp.lt.s32.totalorder %s447_s17, %s447_s17  ;;  %p2095_p9 = scmp.lt.s32.totalorder %s2093_s23, %s2086_s6 }
  0x3f   : > { %p2089_p2 = pnand %p2087_p4, %p2374_p7 }
  0x40   : > { %1882 = dma.hbm_to_vmem [thread:$0]  (!%p2366_p6), %s2741_s5, 256, %s2370_s29, [#allocation6], %s2236_s14, %s2236_s14, %s2237_s15  }
  0x41   : > { %p2090_p5 = pneg %p2089_p2  ;;  %p2096_p10 = por %p2095_p9, %p2094_p8 }
  0x43   : > { %p2097_p11 = pnand %p2096_p10, %p2090_p5 }
  0x45   : > { %2100 = shalt.err (!%p2097_p11)
}
  0x46   : > { %s2742_s7 = sld [smem:[#allocation25_spill]]  ;;  %s2112_s14 = scalar_lea.vmem %s458_s4, 16 }
  0x47   : > { %p2113_p12 = scmp.ne.s32.totalorder %s458_s4, %s2112_s14  ;;  %s2119_s15 = scalar_lea.vmem %s458_s4, 32 }
  0x48   : > { %p2120_p1 = scmp.lt.s32.totalorder %s458_s4, %s458_s4  ;;  %p2121_p3 = scmp.lt.s32.totalorder %s2119_s15, %s2112_s14 }
  0x49   : > { %p2115_p13 = pnand %p2113_p12, %p2374_p7 }
  0x4a   : > { %p2122_p4 = por %p2121_p3, %p2120_p1 }
  0x4b   : > { %p2116_p0 = pneg %p2115_p13 }
  0x4c   : > { %1888 = dma.hbm_to_vmem [thread:$0]  (!%p2366_p6), %s2742_s7, 16, %s447_s17, [#allocation9]  }
  0x4d   : > { %p2123_p2 = pnand %p2122_p4, %p2116_p0 }
  0x4f   : > { %2126 = shalt.err (!%p2123_p2)
}
  0x50   : > { %s2743_s8 = sld [smem:[#allocation26_spill]]  ;;  %s1682_s16 = sadd.s32 4294967294, %s2231_s21  }
  0x51   : > { %s2420_s30 = sadd.s32 1, %s2231_s21   ;;  %s67_s27 = sadd.s32 1, %s2227_s20 }
  0x52   : > { %2744 = sst [smem:[#allocation20_spill]] %s2420_s30  ;;  %s64_s17 = ssub.s32 %s2231_s21, %s2420_s30 }
  0x53   : > { %p74_p7 = scmp.ne.s32.totalorder %s2227_s20, %s2223_s19  ;;  %p65_p5 = scmp.eq.s32.totalorder %s64_s17, 0 }
  0x54   : > { %p75_p8 = scmp.eq.s32.totalorder %s2231_s21, 0  ;;  %p80_p9 = scmp.ne.s32.totalorder %s2223_s19, %s2219_s18 }
  0x55   : > { %p382_p10 = scmp.eq.s32.totalorder %s2352_s24, 1  ;;  %p2746_p12 = scmp.eq.s32.totalorder %s2352_s24, 0 }
  0x56   : > { %1891 = dma.hbm_to_vmem [thread:$0]  (!%p2366_p6), %s2743_s8, 16, %s458_s4, [#allocation12]  }
  0x57   : > { %s2432_s22 = scalar_select %p65_p5, %s2227_s20, %s67_s27  }
  0x58   : > { %p76_p11 = por %p75_p8, %p74_p7  ;;  %p2436_p13 = por %p2746_p12, %p80_p9 }
  0x59   : > { %2745 = sst [smem:[#allocation21_spill]] %s2432_s22  ;;  %p2440_p6 = por %p382_p10, %p74_p7 }
  0x5a   : > { %s2747_s23 = scalar_select %p2436_p13, 1, 0 }
  0x5b   : > { %s2748_s4 = scalar_select %p2440_p6, 1, 0 }
  0x5c   : > { %p388_p0 = scmp.eq.s32.totalorder %s1682_s16, 1  ;;  %p1905_p1 = scmp.lt.s32.totalorder %s2231_s21, 2 }
  0x5d   : > { %s493_s26 = sand.u32 1, %s2227_s20   ;;  %s1690_s14 = sshll.u32 %s2231_s21, 4 }
  0x5e   : > { %p2446_p3 = por %p388_p0, %p80_p9  ;;  %s2454_s28 = scalar_lea.hbm %s2705_s1, %s1690_s14 }
  0x5f   : > { %s496_s27 = scalar_lea.vmem [#allocation2], %s493_s26  ;;  %p2456_p4 = pnand %p1905_p1, %p76_p11 }
  0x60   : > { %s2749_s29 = scalar_select %p2446_p3, 1, 0 }
  0x61   : > { %s503_s17 = sshll.u32 %s496_s27, 4  ;;  %s494_s5 = scalar_lea.sflag [#allocation3], %s493_s26  ;;  %s504_s17 = int_to_ptr.vmem [resolvable:$true] %s503_s17 }
  0x62   : > { %s2127_s7 = scalar_lea.hbm %s2454_s28, 16  ;;  %p2129_p7 = pneg %p2456_p4 }
  0x63   : > { %p2128_p2 = scmp.ne.s32.totalorder %s2454_s28, %s2127_s7  ;;  %s2132_s6 = scalar_lea.hbm %s2705_s1, 32 }
  0x64   : > { %p2133_p9 = scmp.lt.s32.totalorder %s2454_s28, %s2705_s1  ;;  %p2134_p10 = scmp.lt.s32.totalorder %s2132_s6, %s2127_s7 }
  0x65   : > { %p2130_p5 = pnand %p2129_p7, %p2128_p2 }
  0x66   : > { %p2135_p11 = por %p2134_p10, %p2133_p9 }
  0x67   : > { %p2131_p8 = pneg %p2130_p5 }
  0x69   : > { %p2136_p12 = pnand %p2135_p11, %p2131_p8 }
  0x6b   : > { %2139 = shalt.err (!%p2136_p12)
}
  0x6c   : > { %s2140_s27 = scalar_lea.vmem %s504_s17, 16  ;;  %s2240_s26 = smov [#allocation2]  }
  0x6d   : > { %p2141_p0 = scmp.ne.s32.totalorder %s504_s17, %s2140_s27  ;;  %s2145_s20 = sshll.u32 %s2240_s26, 4  ;;  %s2146_s20 = int_to_ptr.vmem [resolvable:$false] %s2145_s20 }
  0x6e   : > { %s2147_s30 = scalar_lea.vmem %s2146_s20, 32  ;;  %p2148_p2 = scmp.lt.s32.totalorder %s504_s17, %s2146_s20 }
  0x6f   : > { %p2143_p1 = pnand %p2141_p0, %p2129_p7  ;;  %p2149_p5 = scmp.lt.s32.totalorder %s2147_s30, %s2140_s27 }
  0x71   : > { %p2144_p3 = pneg %p2143_p1  ;;  %p2150_p6 = por %p2149_p5, %p2148_p2 }
  0x73   : > { %p2151_p13 = pnand %p2150_p6, %p2144_p3 }
  0x75   : > { %2154 = shalt.err (!%p2151_p13)
}
  0x76   : > { %1895 = dma.hbm_to_vmem [thread:$0]  (!%p2456_p4), %s2454_s28, 16, %s504_s17, %s494_s5  }
  0x77   : > { %p2751_p8 = scmp.ne.s32.totalorder %s2736_s25, 0 }
  0x78   : > { %s2477_s7 = sand.u32 (!%p2751_p8), 1, %s2223_s19   ;;  %p2752_p7 = scmp.ne.s32.totalorder (!%p2751_p8), %s2747_s23, 0 }
  0x79   : > { %519 = sbr.rel (%p2751_p8) target bundleno = 2525 (0x9dd), region = 80  ;;  %s522_s8 = scalar_lea.sflag (!%p2751_p8), [#allocation3], %s2477_s7 }
  0x7a   : > { %s524_s22 = scalar_lea.vmem (!%p2751_p8), [#allocation2], %s2477_s7 }
  0x7e   : > { %2198 = dma.done.wait (%p2752_p7), %s522_s8, 16  }
  0x7f   : > { %2200 = vsyncadd (%p2752_p7), %s522_s8, 4294967280  ;;  %p2753_p13 = scmp.eq.s32.totalorder %s2352_s24, 0 }
  0x81   : > { %2202 = dma.done.wait (%p2753_p13), [#allocation6], 304   ;;  %p2754_p6 = pmov %p2753_p13 }
  0x83   : > { %2204 = vsyncadd (%p2754_p6), [#allocation6], 4294966992  ;;  %p2755_p3 = pmov %p2754_p6 }
  0x85   : > { %2206 = dma.done.wait (%p2755_p3), [#allocation9], 32   ;;  %p2756_p4 = pmov %p2755_p3 }
  0x86   : > { %p2757_p9 = pmov %p2755_p3 }
  0x87   : > { %2208 = vsyncadd (%p2756_p4), [#allocation9], 4294967264 }
  0x88   : > { %2210 = dma.done.wait (%p2757_p9), [#allocation12], 16   ;;  %p2758_p10 = pmov %p2755_p3 }
  0x89   : > { %p598_p11 = scmp.lt.s32.totalorder %s2352_s24, 1  ;;  %v2241_v0 = vmov 0   ;;  %v1961_v1 = vld [vmem:[%s2707_s3 + $0x1c] ss:$12 sps:$4 sm:$0xff]   ;;  %v1963_v2 = vld [vmem:[%s2707_s3 + $0x18] ss:$12 sps:$4 sm:$0xff]   ;;  %v622_v10 = vlaneseq }
  0x8a   : > { %2212 = vsyncadd (%p2758_p10), [#allocation12], 4294967280  ;;  %705 = vmatprep.mubr.bf16.mxu1 %v2241_v0  ;;  %1960 = vset.pattern.permute.xlu0 %v2241_v0  ;;  %v1964_v3 = vld [vmem:[%s2707_s3 + $0x4] ss:$12 sps:$4 sm:$0xff]   ;;  %v1966_v4 = vld [vmem:[%s2707_s3] ss:$12 sps:$4 sm:$0xff]  }
  0x8b   : > { %s2499_s5 = scalar_select %p598_p11, %s2352_s24, 1  ;;  %685 = vmatprep.subr.bf16.mxu1 %v1961_v1  ;;  %vm669_vm0 = vcmask 261120   ;;  %v2242_v7 = vmov 0.0   ;;  %vm2243_vm1 = vmmov 0   ;;  %v1967_v8 = vld [vmem:[%s2707_s3 + $0x20] ss:$12 sps:$4 sm:$0xff]  }
  0x8c   : > { %686 = vmatpush1.bf16.msra.mxu1 %v1963_v2  ;;  %1776 = vmatprep.subr.bf16.mxu0 %v2242_v7  ;;  %v1968_v9 = vld [vmem:[%s2707_s3 + $0x8] ss:$12 sps:$4 sm:$0xff]   ;;  %v2541_v11 = vshrl.u32 %v622_v10, 7  ;;  %v620_v13 = vld [vmem:[#allocation5] sm:$0x7]  ;;  %s2244_s28 = smov 120  }
  0x8d   : > { %s1698_s20 = sshll.u32 %s2499_s5, 3  ;;  %687 = vmatprep.subr.bf16.mxu1 %v1964_v3  ;;  %1778 = vmatprep.mubr.msk.bf16.mxu0 %vm2243_vm1, %v2242_v7  ;;  %vm796_vm2 = vcmask 64512   ;;  %s2246_s16 = smov 112   ;;  %vm1042_vm3 = vcmask 1043456   ;;  %v609_v50 = vld [vmem:[%s524_s22] sm:$0x1] }
  0x8e   : > { %s601_s17 = scalar_lea.vmem %s2704_s0, %s1698_s20  ;;  %v624_v12 = vsub.s32 0, %v2541_v11  ;;  %v628_v14 = vsub.s32 1, %v2541_v11  ;;  %v632_v30 = vsub.s32 2, %v2541_v11  ;;  %v610_v51 = vmul.f32 -1e+30, %v609_v50  ;;  %s2247_s22 = smov 8  }
  0x8f   : > { %v2519_v5 = vld [vmem:[%s601_s17] sm:$0xff]  ;;  %s2245_s17 = smov 104   ;;  %s2248_s14 = smov 16   ;;  %vm1237_vm4 = vcmask 130048   ;;  %vm1239_vm5 = vcmask 195584   ;;  %vm1453_vm6 = vcmask 523264  }
  0x90   : > { %v611_v6 = vpack.c.bf16 %v2519_v5, %v2519_v5  ;;  %688 = vmatpush1.bf16.msra.mxu1 %v1966_v4  ;;  %v625_v15 = vrot.slane %v620_v13, %v624_v12  ;;  %v629_v16 = vrot.slane %v620_v13, %v628_v14  ;;  %v633_v34 = vrot.slane %v620_v13, %v632_v30  ;;  %s2249_s15 = smov 24   ;;  %s605_s26 = scalar_lea.vmem %s2706_s2, %s1698_s20 }
  0x91   : > { %1768 = vmatprep.subr.bf16.mxu1 %v2242_v7  ;;  %v985_v52 = vrot.slane %v610_v51, %v624_v12  ;;  %s1697_s25 = sshll.u32 %s2477_s7, 3  ;;  %s2760_s6 = sld [smem:[#allocation28_spill]] }
  0x92   : > { %p2761_p0 = scmp.ne.s32.totalorder %s2748_s4, 0  ;;  %s2250_s5 = smov [#allocation13]  }
  0x93   : > { %1706 = vmatmul.mubr.msk.bf16.vlgmr.msra.gmra.mxu1 %vm669_vm0, %v611_v6  ;;  %s2159_s30 = sshll.u32 %s2250_s5, 4  ;;  %s2160_s30 = int_to_ptr.vmem [resolvable:$false] %s2159_s30 }
  0x94   : > { %1772 = vmatprep.mubr.msk.bf16.mxu1 %vm2243_vm1, %v2242_v7  ;;  %1769 = vmatpush3.bf16.msra.mxu1 %v1967_v8 }
  0x95   : > { %1770 = vmatprep.subr.bf16.mxu1 %v2242_v7 }
  0x98   : > { %1771 = vmatpush3.bf16.msra.mxu1 %v1968_v9 }
  0x99   : > { %1782 = vmatprep.subr.bf16.mxu1 %v2242_v7 }
  0x9b   : > { %1773 = vmatmul.mubr.msk.bf16.vlgmr.msra.gmra.mxu1 %vm669_vm0, %v611_v6 }
  0x9c   : > { %1784 = vmatprep.mubr.msk.bf16.mxu1 %vm2243_vm1, %v2242_v7 }
 0x153   : > { %v707_v17 = vpop.f32.mrf.mxu1 }
 0x154   : > { %v708_v18 = vadd.f32 %v707_v17, %v625_v15 }
 0x155   : > { %v709_v19 = vpop.f32.mrf.mxu1 }
 0x156   : > { %v710_v20 = vadd.f32 %v709_v19, %v629_v16  ;;  %755 = vrot.lane.b32.xlu1 %v708_v18, %s2244_s28  ;;  %v764_v25 = vpack.c.bf16 %v708_v18, %v708_v18 }
 0x157   : > { %v711_v21 = vpop.f32.mrf.mxu1 }
 0x158   : > { %769 = vrot.lane.b32.xlu0 %v710_v20, %s2244_s28  ;;  %v778_v22 = vpack.c.bf16 %v710_v20, %v710_v20 }
 0x159   : > { %v712_v23 = vpop.f32.mrf.mxu1 }
 0x15a   : > { %775 = vrot.lane.b32.xlu1 %v710_v20, %s2245_s17  ;;  %v801_v24 = vsel %vm796_vm2, %v778_v22, 0 }
 0x15b   : > { %1777 = vmatpush3.bf16.xpose.msra.mxu0 %v801_v24  ;;  %v748_v26 = vpop.f32.mrf.mxu1 }
 0x15c   : > { %772 = vrot.lane.b32.xlu0 %v710_v20, %s2246_s16  ;;  %1788 = vmatprep.subr.bf16.mxu0 %v2242_v7  ;;  %v2561_v39 = vadd.f32 %v748_v26, %v633_v34 }
 0x15d   : > { %v1774_v27 = vpop.f32.mrf.mxu1 }
 0x15e   : > { %761 = vrot.lane.b32.xlu1 %v708_v18, %s2245_s17  ;;  %v792_v43 = vpack.c.bf16 %v2561_v39, %v2561_v39 }
 0x15f   : > { %v751_v28 = vpop.f32.mrf.mxu1 }
 0x160   : > { %758 = vrot.lane.b32.xlu0 %v708_v18, %s2246_s16  ;;  %v1044_v47 = vsel %vm1042_vm3, %v792_v43, 0 }
 0x161   : > { %v1775_v29 = vpop.f32.mrf.mxu1 }
 0x162   : > { %1779 = vmatmul.mubr.msk.bf16.vlgmr.msra.gmra.mxu0 %vm796_vm2, %v764_v25 }
 0x163   : > { %1790 = vmatprep.mubr.msk.bf16.mxu0 %vm2243_vm1, %v2242_v7 }
 0x1c8   : > { %v756_v31 = vpop.permute.xlu1 %755 }
 0x1c9   : > { %v765_v42 = vpack.c.bf16 %v756_v31, %v756_v31 }
 0x1ca   : > { %v770_v32 = vpop.permute.xlu0 %769 }
 0x1cb   : > { %v779_v33 = vpack.c.bf16 %v770_v32, %v770_v32 }
 0x1cc   : > { %v776_v36 = vpop.permute.xlu1 %775 }
 0x1cd   : > { %v847_v35 = vsel %vm796_vm2, %v779_v33, 0  ;;  %v781_v40 = vpack.c.bf16 %v776_v36, %v776_v36 }
 0x1ce   : > { %1783 = vmatpush3.bf16.xpose.msra.mxu1 %v847_v35  ;;  %v773_v37 = vpop.permute.xlu0 %772 }
 0x1cf   : > { %v780_v38 = vpack.c.bf16 %v773_v37, %v773_v37  ;;  %1794 = vmatprep.subr.bf16.mxu1 %v2242_v7  ;;  %v939_v45 = vsel %vm796_vm2, %v781_v40, 0 }
 0x1d0   : > { %v762_v48 = vpop.permute.xlu1 %761 }
 0x1d1   : > { %v893_v41 = vsel %vm796_vm2, %v780_v38, 0  ;;  %v767_v49 = vpack.c.bf16 %v762_v48, %v762_v48 }
 0x1d2   : > { %1789 = vmatpush3.bf16.xpose.msra.mxu0 %v893_v41  ;;  %v759_v44 = vpop.permute.xlu0 %758 }
 0x1d3   : > { %1800 = vmatprep.subr.bf16.mxu0 %v2242_v7  ;;  %v766_v46 = vpack.c.bf16 %v759_v44, %v759_v44 }
 0x1d5   : > { %1785 = vmatmul.mubr.msk.bf16.vlgmr.msra.gmra.mxu1 %vm796_vm2, %v765_v42 }
 0x1d6   : > { %1795 = vmatpush3.bf16.xpose.msra.mxu1 %v939_v45  ;;  %1796 = vmatprep.mubr.msk.bf16.mxu1 %vm2243_vm1, %v2242_v7 }
 0x1d7   : > { %1806 = vmatprep.subr.bf16.mxu1 %v2242_v7 }
 0x1d9   : > { %1791 = vmatmul.mubr.msk.bf16.vlgmr.msra.gmra.mxu0 %vm796_vm2, %v766_v46 }
 0x1da   : > { %1801 = vmatpush3.bf16.msra.mxu0 %v1044_v47  ;;  %1802 = vmatprep.mubr.msk.bf16.mxu0 %vm2243_vm1, %v2242_v7 }
 0x1db   : > { %1812 = vmatprep.subr.bf16.mxu0 %v2242_v7 }
 0x1dd   : > { %1797 = vmatmul.mubr.msk.bf16.vlgmr.msra.gmra.mxu1 %vm796_vm2, %v767_v49 }
 0x1de   : > { %1808 = vmatprep.mubr.msk.bf16.mxu1 %vm2243_vm1, %v2242_v7 }
 0x222   : > { %v837_v53 = vpop.f32.mrf.mxu0 }
 0x223   : > { %v987_v54 = vadd.f32 %v985_v52, %v837_v53 }
 0x224   : > { %v1780_v55 = vpop.f32.mrf.mxu0 }
 0x225   : > { %v991_v56 = vsel %vm796_vm2, %v987_v54, -inf }
 0x226   : > { %992 = vmax.xlane.f32.xlu0 %v991_v56  ;;  %v840_v57 = vpop.f32.mrf.mxu0 }
 0x228   : > { %v1781_v58 = vpop.f32.mrf.mxu0 }
 0x295   : > { %v883_v59 = vpop.f32.mrf.mxu1 }
 0x296   : > { %v988_v60 = vadd.f32 %v985_v52, %v883_v59 }
 0x297   : > { %v1786_v61 = vpop.f32.mrf.mxu1 }
 0x298   : > { %v994_v62 = vsel %vm796_vm2, %v988_v60, -inf }
 0x299   : > { %995 = vmax.xlane.f32.xlu1 %v994_v62  ;;  %v886_v63 = vpop.f32.mrf.mxu1  ;;  %v929_v0 = vpop.f32.mrf.mxu0 }
 0x29a   : > { %v989_v1 = vadd.f32 %v985_v52, %v929_v0  ;;  %v1969_v0 = vld [vmem:[#allocation7 + $0x8] sm:$0xff]  }
 0x29b   : > { %v1787_v2 = vpop.f32.mrf.mxu1  ;;  %v1792_v3 = vpop.f32.mrf.mxu0 }
 0x29c   : > { %v997_v4 = vsel %vm796_vm2, %v989_v1, -inf }
 0x29d   : > { %v975_v6 = vpop.f32.mrf.mxu1  ;;  %998 = vmax.xlane.f32.xlu0 %v997_v4  ;;  %v932_v8 = vpop.f32.mrf.mxu0 }
 0x29e   : > { %v990_v9 = vadd.f32 %v985_v52, %v975_v6 }
 0x29f   : > { %v1793_v10 = vpop.f32.mrf.mxu0  ;;  %v1798_v11 = vpop.f32.mrf.mxu1 }
 0x2a0   : > { %v1000_v12 = vsel %vm796_vm2, %v990_v9, -inf }
 0x2a1   : > { %v978_v13 = vpop.f32.mrf.mxu1  ;;  %1001 = vmax.xlane.f32.xlu0 %v1000_v12 }
 0x2a3   : > { %v1799_v14 = vpop.f32.mrf.mxu1 }
 0x2aa   : > { %783 = vrot.lane.b32.xlu1 %v2561_v39, %s2244_s28  ;;  %s2759_s28 = sld [smem:[#allocation27_spill]] }
 0x2af   : > { %v993_v15 = vpop.xlane.xlu0 %992 }
 0x2b0   : > { %v1003_v16 = vsub.f32 %v987_v54, %v993_v15 }
 0x2b2   : > { %v1007_v17 = vmul.f32 1.442695, %v1003_v16 }
 0x2b4   : > { %1977 = vpow2.f32 %v1007_v17 }
 0x2c1   : > { %v1978_v18 = vpop.eup %1977 }
 0x2c2   : > { %v1015_v19 = vsel %vm796_vm2, %v1978_v18, 0.0 }
 0x2ce   : > { %1016 = vadd.xlane.f32.xlu1 %v1015_v19 }
 0x322   : > { %v996_v20 = vpop.xlane.xlu1 %995 }
 0x323   : > { %v1004_v21 = vsub.f32 %v988_v60, %v996_v20 }
 0x325   : > { %v1009_v22 = vmul.f32 1.442695, %v1004_v21 }
 0x326   : > { %v784_v23 = vpop.permute.xlu1 %783  ;;  %v999_v24 = vpop.xlane.xlu0 %998 }
 0x327   : > { %1979 = vpow2.f32 %v1009_v22  ;;  %v793_v25 = vpack.c.bf16 %v784_v23, %v784_v23  ;;  %v1005_v26 = vsub.f32 %v989_v1, %v999_v24  ;;  %v1970_v1 = vld [vmem:[#allocation7] sm:$0xff]   ;;  %v1716_v23 = vld [vmem:[#allocation8] ss:$0 sm:$0xff] }
 0x329   : > { %v1090_v27 = vsel %vm1042_vm3, %v793_v25, 0  ;;  %v1011_v28 = vmul.f32 1.442695, %v1005_v26 }
 0x32a   : > { %1807 = vmatpush3.bf16.msra.mxu1 %v1090_v27  ;;  %v1002_v29 = vpop.xlane.xlu0 %1001 }
 0x32b   : > { %1981 = vpow2.f32 %v1011_v28  ;;  %v1006_v30 = vsub.f32 %v990_v9, %v1002_v29  ;;  %1818 = vmatprep.subr.bf16.mxu1 %v2242_v7 }
 0x32d   : > { %v1013_v31 = vmul.f32 1.442695, %v1006_v30 }
 0x32f   : > { %1983 = vpow2.f32 %v1013_v31  ;;  %v608_v31 = vld [vmem:[%s605_s26] sm:$0xff]  ;;  %s1530_s26 = scalar_lea.sflag [#allocation4], %s2477_s7 }
 0x334   : > { %v1980_v32 = vpop.eup %1979 }
 0x335   : > { %v1018_v33 = vsel %vm796_vm2, %v1980_v32, 0.0 }
 0x336   : > { %1019 = vadd.xlane.f32.xlu0 %v1018_v33 }
 0x338   : > { %v1982_v34 = vpop.eup %1981 }
 0x339   : > { %v1021_v35 = vsel %vm796_vm2, %v1982_v34, 0.0 }
 0x33a   : > { %1022 = vadd.xlane.f32.xlu1 %v1021_v35 }
 0x33c   : > { %v1984_v36 = vpop.eup %1983 }
 0x33d   : > { %v1024_v37 = vsel %vm796_vm2, %v1984_v36, 0.0 }
 0x33e   : > { %1025 = vadd.xlane.f32.xlu0 %v1024_v37  ;;  %v1972_v37 = vld [vmem:[%s2713_s9] sm:$0xff]  }
 0x34b   : > { %789 = vrot.lane.b32.xlu1 %v2561_v39, %s2245_s17  ;;  %s1735_s17 = sshll.u32 %s2352_s24, 7  ;;  %s2161_s24 = scalar_lea.vmem %s2160_s30, 256 }
 0x34c   : > { %s1541_s27 = scalar_lea.hbm %s2760_s6, %s1735_s17 }
 0x354   : > { %786 = vrot.lane.b32.xlu0 %v2561_v39, %s2246_s16  ;;  %s597_s16 = scalar_lea.vmem [#allocation13], %s1697_s25 }
 0x357   : > { %v1017_v38 = vpop.xlane.xlu1 %1016 }
 0x358   : > { %1985 = vrcp.f32 %v1017_v38  ;;  %v1973_v38 = vld [vmem:[%s2715_s11 + $0x18] sm:$0xff]  }
 0x365   : > { %v1986_v40 = vpop.eup %1985 }
 0x366   : > { %v1031_v41 = vmul.f32 %v1986_v40, %v1978_v18  ;;  %v1974_v40 = vld [vmem:[%s2715_s11 + $0x10] sm:$0xff]  }
 0x368   : > { %v1035_v42 = vpack.c.bf16 %v1031_v41, %v1031_v41 }
 0x36a   : > { %1803 = vmatmul.mubr.msk.bf16.vlgmr.msra.gmra.mxu0 %vm796_vm2, %v1035_v42 }
 0x36b   : > { %1814 = vmatprep.mubr.msk.bf16.mxu0 %vm2243_vm1, %v2242_v7 }
 0x3bf   : > { %v1020_v43 = vpop.xlane.xlu0 %1019 }
 0x3c0   : > { %1987 = vrcp.f32 %v1020_v43 }
 0x3c3   : > { %v1023_v44 = vpop.xlane.xlu1 %1022 }
 0x3c4   : > { %1989 = vrcp.f32 %v1023_v44 }
 0x3c7   : > { %v1026_v45 = vpop.xlane.xlu0 %1025  ;;  %v790_v46 = vpop.permute.xlu1 %789 }
 0x3c8   : > { %1991 = vrcp.f32 %v1026_v45  ;;  %v795_v49 = vpack.c.bf16 %v790_v46, %v790_v46  ;;  %v1720_v45 = vld [vmem:[#allocation10] ss:$0 sm:$0xff] }
 0x3ca   : > { %v1182_v54 = vsel %vm1042_vm3, %v795_v49, 0 }
 0x3cb   : > { %v787_v47 = vpop.permute.xlu0 %786 }
 0x3cc   : > { %v794_v48 = vpack.c.bf16 %v787_v47, %v787_v47  ;;  %v1721_v47 = vld [vmem:[#allocation11] ss:$0 sm:$0xff] }
 0x3cd   : > { %v1988_v39 = vpop.eup %1987 }
 0x3ce   : > { %v1136_v50 = vsel %vm1042_vm3, %v794_v48, 0  ;;  %v1032_v51 = vmul.f32 %v1988_v39, %v1980_v32 }
 0x3cf   : > { %1813 = vmatpush3.bf16.msra.mxu0 %v1136_v50 }
 0x3d0   : > { %v1036_v52 = vpack.c.bf16 %v1032_v51, %v1032_v51  ;;  %1824 = vmatprep.subr.bf16.mxu0 %v2242_v7 }
 0x3d1   : > { %v1990_v53 = vpop.eup %1989 }
 0x3d2   : > { %1809 = vmatmul.mubr.msk.bf16.vlgmr.msra.gmra.mxu1 %vm796_vm2, %v1036_v52  ;;  %v1033_v55 = vmul.f32 %v1990_v53, %v1982_v34  ;;  %v1975_v52 = vld [vmem:[%s2715_s11 + $0x8] sm:$0xff]   ;;  %v1976_v53 = vld [vmem:[%s2715_s11] sm:$0xff]  }
 0x3d3   : > { %1819 = vmatpush3.bf16.msra.mxu1 %v1182_v54  ;;  %1820 = vmatprep.mubr.msk.bf16.mxu1 %vm2243_vm1, %v2242_v7  ;;  %v1722_v54 = vld [vmem:[%s2714_s10] ss:$0 sm:$0xff] }
 0x3d4   : > { %v1037_v56 = vpack.c.bf16 %v1033_v55, %v1033_v55  ;;  %1832 = vmatprep.subr.bf16.mxu1 %v2242_v7 }
 0x3d5   : > { %v1992_v57 = vpop.eup %1991 }
 0x3d6   : > { %1815 = vmatmul.mubr.msk.bf16.vlgmr.msra.gmra.mxu0 %vm796_vm2, %v1037_v56  ;;  %v1034_v58 = vmul.f32 %v1992_v57, %v1984_v36 }
 0x3d7   : > { %1828 = vmatprep.mubr.msk.bf16.mxu0 %vm2243_vm1, %v2242_v7  ;;  %1825 = vmatpush3.bf16.msra.mxu0 %v1969_v0 }
 0x3d8   : > { %v1038_v59 = vpack.c.bf16 %v1034_v58, %v1034_v58  ;;  %1826 = vmatprep.subr.bf16.mxu0 %v2242_v7 }
 0x3da   : > { %1821 = vmatmul.mubr.msk.bf16.vlgmr.msra.gmra.mxu1 %vm796_vm2, %v1038_v59 }
 0x3db   : > { %1836 = vmatprep.mubr.msk.bf16.mxu1 %vm2243_vm1, %v2242_v7  ;;  %1827 = vmatpush3.bf16.msra.mxu0 %v1970_v1 }
 0x3dc   : > { %1840 = vmatprep.subr.bf16.mxu0 %v2242_v7 }
 0x42a   : > { %v1080_v60 = vpop.f32.mrf.mxu0 }
 0x42c   : > { %v1804_v61 = vpop.f32.mrf.mxu0 }
 0x42e   : > { %v1083_v62 = vpop.f32.mrf.mxu0 }
 0x430   : > { %v1805_v63 = vpop.f32.mrf.mxu0 }
 0x492   : > { %v1126_v2 = vpop.f32.mrf.mxu1 }
 0x493   : > { %1225 = vrot.lane.b32.xlu1 %v1126_v2, %s2247_s22  ;;  %s1543_s22 = sshll.u32 %s597_s16, 4  ;;  %s1544_s22 = int_to_ptr.vmem [resolvable:$true] %s1543_s22 }
 0x494   : > { %v1810_v3 = vpop.f32.mrf.mxu1  ;;  %s2155_s8 = scalar_lea.vmem %s1544_s22, 128  ;;  %p2162_p5 = scmp.lt.s32.totalorder %s1544_s22, %s2160_s30 }
 0x495   : > { %p2156_p12 = scmp.ne.s32.totalorder %s1544_s22, %s2155_s8  ;;  %p2163_p8 = scmp.lt.s32.totalorder %s2161_s24, %s2155_s8 }
 0x496   : > { %v1129_v4 = vpop.f32.mrf.mxu1  ;;  %v1172_v6 = vpop.f32.mrf.mxu0 }
 0x497   : > { %1229 = vrot.lane.b32.xlu0 %v1172_v6, %s2248_s14  ;;  %p2157_p1 = pnand %p2156_p12, %p2761_p0  ;;  %p2164_p7 = por %p2163_p8, %p2162_p5 }
 0x498   : > { %v1811_v8 = vpop.f32.mrf.mxu1  ;;  %v1816_v9 = vpop.f32.mrf.mxu0 }
 0x499   : > { %p2158_p2 = pneg %p2157_p1 }
 0x49a   : > { %v1175_v10 = vpop.f32.mrf.mxu0  ;;  %v1218_v11 = vpop.f32.mrf.mxu1 }
 0x49b   : > { %1233 = vrot.lane.b32.xlu1 %v1218_v11, %s2249_s15  ;;  %p2165_p13 = pnand %p2164_p7, %p2158_p2 }
 0x49c   : > { %v1817_v12 = vpop.f32.mrf.mxu0  ;;  %v1822_v13 = vpop.f32.mrf.mxu1 }
 0x49e   : > { %v1221_v14 = vpop.f32.mrf.mxu1 }
 0x4a0   : > { %v1823_v15 = vpop.f32.mrf.mxu1 }
 0x505   : > { %v1226_v16 = vpop.permute.xlu1 %1225 }
 0x506   : > { %v1236_v18 = vsel %vm796_vm2, %v1080_v60, %v1226_v16  ;;  %v1732_v16 = vld [vmem:[%s2717_s13] ss:$0 sm:$0xff] }
 0x509   : > { %v1230_v17 = vpop.permute.xlu0 %1229 }
 0x50a   : > { %v1238_v19 = vsel %vm1237_vm4, %v1236_v18, %v1230_v17  ;;  %v1733_v18 = vld [vmem:[%s2759_s28] ss:$0 sm:$0xff] }
 0x50d   : > { %v1234_v20 = vpop.permute.xlu1 %1233 }
 0x50e   : > { %v1240_v21 = vsel %vm1239_vm5, %v1238_v19, %v1234_v20 }
 0x50f   : > { %v1241_v22 = vpack.c.bf16 %v1240_v21, %v1240_v21 }
 0x511   : > { %1829 = vmatmul.mubr.msk.bf16.vlgmr.msra.gmra.mxu0 %vm669_vm0, %v1241_v22 }
 0x512   : > { %1848 = vmatprep.mubr.msk.bf16.mxu0 %vm2243_vm1, %v2242_v7  ;;  %1841 = vmatpush3.bf16.msra.mxu0 %v1973_v38 }
 0x513   : > { %1842 = vmatprep.subr.bf16.mxu0 %v2242_v7 }
 0x516   : > { %1843 = vmatpush3.bf16.msra.mxu0 %v1974_v40 }
 0x517   : > { %1844 = vmatprep.subr.bf16.mxu0 %v2242_v7 }
 0x51a   : > { %1845 = vmatpush3.bf16.msra.mxu0 %v1975_v52 }
 0x51b   : > { %1846 = vmatprep.subr.bf16.mxu0 %v2242_v7 }
 0x51e   : > { %1847 = vmatpush3.bf16.msra.mxu0 %v1976_v53 }
 0x5d1   : > { %v1302_v24 = vpop.f32.mrf.mxu0 }
 0x5d2   : > { %v1303_v25 = vadd.f32 %v1716_v23, %v1302_v24 }
 0x5d3   : > { %v1830_v26 = vpop.f32.mrf.mxu0 }
 0x5d4   : > { %v1308_v27 = vadd.f32 %v1303_v25, %v2519_v5  ;;  %v1971_v5 = vld [vmem:[%s2713_s9 + $0x8] sm:$0xff]  }
 0x5d5   : > { %v1305_v28 = vpop.f32.mrf.mxu0  ;;  %1833 = vmatpush3.bf16.msra.mxu1 %v1971_v5 }
 0x5d6   : > { %v1311_v29 = vsel %vm669_vm0, %v1308_v27, 0.0  ;;  %1834 = vmatprep.subr.bf16.mxu1 %v2242_v7  ;;  %v1726_v7 = vld [vmem:[%s2716_s12] ss:$0 sm:$0xff] }
 0x5d7   : > { %1312 = vadd.xlane.f32.xlu0 %v1311_v29  ;;  %v1831_v30 = vpop.f32.mrf.mxu0 }
 0x5d9   : > { %1835 = vmatpush3.bf16.msra.mxu1 %v1972_v37 }
 0x5ed   : > { %1341 = vperm.xlu0 %1960, %v608_v31  }
 0x660   : > { %v1313_v32 = vpop.xlane.xlu0 %1312 }
 0x661   : > { %v1315_v33 = vmul.f32 0.03125, %v1313_v32 }
 0x663   : > { %v1316_v34 = vsub.f32 %v1308_v27, %v1315_v33 }
 0x665   : > { %v1317_v35 = vmul.f32 %v1316_v34, %v1316_v34 }
 0x667   : > { %v1318_v36 = vsel %vm669_vm0, %v1317_v35, 0.0 }
 0x668   : > { %1319 = vadd.xlane.f32.xlu1 %v1318_v36  ;;  %v1342_v39 = vpop.permute.xlu0 %1341 }
 0x6f1   : > { %v1320_v41 = vpop.xlane.xlu1 %1319 }
 0x6f2   : > { %v1321_v42 = vmul.f32 0.03125, %v1320_v41 }
 0x6f4   : > { %v1322_v43 = vadd.f32 1e-05, %v1321_v42 }
 0x6f6   : > { %1993 = vrsqrt.f32 %v1322_v43 }
 0x703   : > { %v1994_v44 = vpop.eup %1993 }
 0x704   : > { %v1324_v46 = vmul.f32 %v1994_v44, %v1316_v34 }
 0x706   : > { %v1331_v48 = vmul.f32 %v1720_v45, %v1324_v46 }
 0x708   : > { %v1338_v49 = vadd.f32 %v1721_v47, %v1331_v48 }
 0x70a   : > { %v1344_v50 = vmul.f32 %v1342_v39, %v1338_v49 }
 0x70c   : > { %v1345_v51 = vpack.c.bf16 %v1344_v50, %v1344_v50 }
 0x70e   : > { %1837 = vmatmul.mubr.msk.bf16.vlgmr.msra.gmra.mxu1 %vm669_vm0, %v1345_v51 }
 0x7ce   : > { %v1406_v55 = vpop.f32.mrf.mxu1 }
 0x7cf   : > { %v1407_v56 = vadd.f32 %v1722_v54, %v1406_v55 }
 0x7d0   : > { %v1838_v57 = vpop.f32.mrf.mxu1 }
 0x7d1   : > { %v1412_v58 = vmax.f32 %v1407_v56, 0.0 }
 0x7d2   : > { %v1409_v59 = vpop.f32.mrf.mxu1 }
 0x7d3   : > { %v1413_v60 = vpack.c.bf16 %v1412_v58, %v1412_v58 }
 0x7d4   : > { %v1839_v61 = vpop.f32.mrf.mxu1 }
 0x7d5   : > { %1849 = vmatmul.mubr.msk.bf16.vlgmr.msra.gmra.mxu0 %vm1453_vm6, %v1413_v60 }
 0x895   : > { %v1491_v62 = vpop.f32.mrf.mxu0 }
 0x896   : > { %v1492_v63 = vadd.f32 %v1726_v7, %v1491_v62 }
 0x897   : > { %v1850_v0 = vpop.f32.mrf.mxu0 }
 0x898   : > { %v1497_v1 = vadd.f32 %v1492_v63, %v1344_v50 }
 0x899   : > { %v1494_v2 = vpop.f32.mrf.mxu0 }
 0x89a   : > { %v1500_v3 = vsel %vm669_vm0, %v1497_v1, 0.0 }
 0x89b   : > { %1501 = vadd.xlane.f32.xlu1 %v1500_v3  ;;  %v1851_v4 = vpop.f32.mrf.mxu0 }
 0x924   : > { %v1502_v6 = vpop.xlane.xlu1 %1501 }
 0x925   : > { %v1503_v8 = vmul.f32 0.03125, %v1502_v6 }
 0x927   : > { %v1504_v9 = vsub.f32 %v1497_v1, %v1503_v8 }
 0x929   : > { %v1505_v10 = vmul.f32 %v1504_v9, %v1504_v9 }
 0x92b   : > { %v1506_v11 = vsel %vm669_vm0, %v1505_v10, 0.0 }
 0x92c   : > { %1507 = vadd.xlane.f32.xlu1 %v1506_v11 }
 0x9b5   : > { %v1508_v12 = vpop.xlane.xlu1 %1507 }
 0x9b6   : > { %v1509_v13 = vmul.f32 0.03125, %v1508_v12 }
 0x9b8   : > { %v1510_v14 = vadd.f32 1e-05, %v1509_v13 }
 0x9ba   : > { %1995 = vrsqrt.f32 %v1510_v14 }
 0x9c7   : > { %v1996_v15 = vpop.eup %1995 }
 0x9c8   : > { %v1512_v17 = vmul.f32 %v1996_v15, %v1504_v9 }
 0x9ca   : > { %v1519_v19 = vmul.f32 %v1732_v16, %v1512_v17 }
 0x9cc   : > { %v1526_v20 = vadd.f32 %v1733_v18, %v1519_v19 }
 0x9ce   : > { %v1527_v21 = vmul.f32 %v1526_v20, %v1342_v39 }
 0x9d0   : > { %1528 = vst.msk [vmem:[%s597_s16] sm:$0xff] %vm669_vm0, %v1527_v21 }
 0x9d1   : > { %2168 = shalt.err (!%p2165_p13)
}
 0x9d2   : > { %s2169_s25 = scalar_lea.hbm %s1541_s27, 128  ;;  %s2173_s23 = scalar_lea.hbm %s2760_s6, 256 }
 0x9d3   : > { %p2170_p6 = scmp.ne.s32.totalorder %s1541_s27, %s2169_s25  ;;  %p2174_p9 = scmp.lt.s32.totalorder %s1541_s27, %s2760_s6 }
 0x9d4   : > { %p2175_p10 = scmp.lt.s32.totalorder %s2173_s23, %s2169_s25 }
 0x9d5   : > { %p2171_p3 = pnand %p2170_p6, %p2761_p0 }
 0x9d6   : > { %p2176_p11 = por %p2175_p10, %p2174_p9 }
 0x9d7   : > { %p2172_p4 = pneg %p2171_p3 }
 0x9d9   : > { %p2177_p12 = pnand %p2176_p11, %p2172_p4 }
 0x9db   : > { %2180 = shalt.err (!%p2177_p12)
}
 0x9dc   : > { %1874 = dma.vmem_to_hbm [thread:$0]  (%p2761_p0), %s1544_s22, 128, %s1541_s27, %s1530_s26  }
 0x9dd PF: > { %s1555_s16 = sand.u32 1, %s2219_s18   ;;  %p2762_p1 = scmp.ne.s32.totalorder %s2749_s29, 0 }
 0x9de   : > { %p2763_p2 = scmp.ge.s32.totalorder %s2231_s21, 2  ;;  %s1556_s14 = scalar_lea.sflag [#allocation4], %s1555_s16 }
 0x9e0   : > { %p1897_p5 = pnand %p2763_p2, %p2762_p1 }
 0x9e2   : > { %p1898_p8 = pneg %p1897_p5 }
 0x9e4   : > { %2214 = dma.done.wait (%p1898_p8), %s1556_s14, 128  }
 0x9e5   : > { %2216 = vsyncadd (%p1898_p8), %s1556_s14, 4294967168  ;;  %s2764_s21 = sld [smem:[#allocation20_spill]]  ;;  %s2767_s18 = smov %s2223_s19 }
 0x9e6   : > { %s2765_s15 = sld [smem:[#allocation19_spill]] }
 0x9e7   : > { %s2766_s20 = sld [smem:[#allocation21_spill]] }
 0x9eb   : > { %p31_p7 = scmp.ge.s32.totalorder %s2764_s21, 4  }
 0x9ec   : > { %s2768_s19 = smov %s2765_s15 }
 0x9ed   :  { %33 = sbr.rel (!%p31_p7) target bundleno = 16 (0x10), region = 151 }
 0x9f2   :  { %1561 = vsyncpa [#allocation3], 1 }
 0x9f3   :  { %1563 = vsyncpa [#allocation3 + $0x1], 1 }
 0x9f4   :  { %1564 = vsyncpa [#allocation6], 1 }
 0x9f5   :  { %1565 = vsyncpa [#allocation9], 1 }
 0x9f6   :  { %1566 = vsyncpa [#allocation12], 1 }
 0x9f7   :  { %1567 = vsyncpa [#allocation4], 1 }
 0x9f8   :  { %1569 = vsyncpa [#allocation4 + $0x1], 1 }

</bundles_post_ra>
